<compile_context>
chip_gen: v7x
topology: tpu7x:2x2x1
jax: 0.10.0
libtpu: 0.0.40
codegen_flags: <defaults>
</compile_context>

<pallas_src>
import functools

import jax
import jax.numpy as jnp
from jax.experimental import pallas as pl
from jax.experimental.pallas import tpu as pltpu

_LANE = 128     # TPU lane width (last dim)
_SUBLANE = 8    # TPU sublane width (second-to-last dim)


def _round_up(n, m):
    return ((n + m - 1) // m) * m


# --------------------------------------------------------------------------- kernel
def _dense_glue_rms_kernel(x_ref, w1_ref, b1_ref, wg_ref, bg_ref,
                           w2_ref, b2_ref, o_ref, *, hidden_dim, eps):
    """One (TB, INp) batch tile -> one (TB, OUTp) output tile, fully fused."""
    cdt = wg_ref.dtype                                  # MXU operand dtype (bf16 or f32)
    x = x_ref[...]                                      # already cast to cdt in wrapper

    # fc1 (f32 accumulation on the MXU)
    h = (jnp.dot(x, w1_ref[...], preferred_element_type=jnp.float32)
         + b1_ref[...].astype(jnp.float32))
    h_op = h.astype(cdt)                                # both operands in cdt -> native rate

    # GLUE: fused (Hp, 2Hp) weight, computed as two lane-aligned halves so the live
    # f32 scratch is ~2x(TB,Hp) instead of ~4x(TB,Hp).
    hp = wg_ref.shape[1] // 2                           # static, multiple of 128
    a = (jnp.dot(h_op, wg_ref[:, :hp], preferred_element_type=jnp.float32)
         + bg_ref[:, :hp].astype(jnp.float32))
    b = (jnp.dot(h_op, wg_ref[:, hp:], preferred_element_type=jnp.float32)
         + bg_ref[:, hp:].astype(jnp.float32))
    g = a * jax.nn.sigmoid(b)                           # sigmoid -> EUP slot

    # RMSNorm over the *real* hidden dim. Padded hidden lanes of g are exactly zero
    # (zero-padded weights/biases), so sum * (1/H) == mean over the true features.
    ms = jnp.sum(g * g, axis=-1, keepdims=True) * (1.0 / hidden_dim)
    n = (g * jax.lax.rsqrt(ms + eps)).astype(cdt)       # gamma already folded into w2

    # fc2 (regression head, gamma folded in)
    o_ref[...] = (jnp.dot(n, w2_ref[...], preferred_element_type=jnp.float32)
                  + b2_ref[...].astype(jnp.float32)).astype(o_ref.dtype)


# --------------------------------------------------------------------------- wrapper
def dense_glue_rms_forward(x, params, *, block_rows=512, min_grid_tiles=4):
    """x: (B, in_dim). params: output of prepare_params()."""
    w1, b1 = params["w1"], params["b1"]
    wg, bg = params["wg"], params["bg"]
    w2, b2 = params["w2"], params["b2"]
    in_dim = params["in_dim"]
    hidden_dim = params["hidden_dim"]
    out_dim = params["out_dim"]

    B, xin = x.shape
    assert xin == in_dim, (xin, in_dim)
    inp = w1.shape[0]           # lane-padded in_dim
    hp = w1.shape[1]            # lane-padded hidden_dim
    outp = w2.shape[1]          # lane-padded out_dim
    wdt = w1.dtype              # activation / MXU operand dtype

    # Both MXU operands in the weight dtype; pad the feature dim to the lane width.
    x = x.astype(wdt)
    if inp != in_dim:
        x = jnp.pad(x, ((0, 0), (0, inp - in_dim)))

    # Batch tile: multiple of 8 sublanes, at most `block_rows`; shrink so there are at
    # least `min_grid_tiles` grid steps (keeps both v7x TCs busy AND pipelined).
    tb = _round_up(min(block_rows, B), _SUBLANE)
    if pl.cdiv(B, tb) < min_grid_tiles:
        tb = max(_SUBLANE, _round_up(pl.cdiv(B, min_grid_tiles), _SUBLANE))
    bp = _round_up(B, tb)
    if bp != B:
        x = jnp.pad(x, ((0, bp - B), (0, 0)))
    grid = (bp // tb,)

    # Generation-aware VMEM budget: resident (single-buffered) weights + double-buffered
    # x/out tiles + f32 intermediates the compiler keeps live, capped at ~80% of the
    # physical VMEM of whatever chip we're on (64 MiB v7x vs 128 MiB v5e/v6e).
    itemsize = jnp.dtype(wdt).itemsize
    wbytes = sum(a.size * jnp.dtype(a.dtype).itemsize for a in (w1, b1, wg, bg, w2, b2))
    io_bytes = 2 * tb * (inp + outp) * itemsize
    scratch_bytes = 4 * tb * hp * 4
    budget = wbytes + io_bytes + scratch_bytes + (4 << 20)
    try:
        phys_vmem = int(getattr(pltpu.get_tpu_info(), "vmem_capacity_bytes", 128 << 20))
    except Exception:
        phys_vmem = 128 << 20
    cap = int(0.8 * phys_vmem)
    vmem_limit = int(min(max(budget, 32 << 20), cap))

    # Cost hint so XLA schedules surrounding ops around the custom call.
    flops = 2 * bp * (inp * hp + 2 * hp * hp + hp * outp)
    cost = pl.CostEstimate(
        flops=int(flops),
        transcendentals=int(bp * hp + bp),
        bytes_accessed=int(wbytes + bp * (inp + outp) * itemsize),
    )

    kernel = functools.partial(_dense_glue_rms_kernel,
                               hidden_dim=hidden_dim, eps=1e-6)

    def _call(single_buffer_weights):
        # Constant index_map => each weight is DMA'd exactly once and stays resident;
        # single-buffering it halves resident-weight VMEM (never re-fetched anyway).
        if single_buffer_weights:
            const = lambda shape: pl.BlockSpec(shape, lambda i: (0, 0),
                                               pipeline_mode=pl.Buffered(1))
        else:
            const = lambda shape: pl.BlockSpec(shape, lambda i: (0, 0))
        return pl.pallas_call(
            kernel,
            out_shape=jax.ShapeDtypeStruct((bp, outp), wdt),
            grid=grid,
            in_specs=[
                pl.BlockSpec((tb, inp), lambda i: (i, 0)),   # x: streamed per batch tile
                const((inp, hp)),     const((1, hp)),        # fc1        (resident)
                const((hp, 2 * hp)),  const((1, 2 * hp)),    # fused GLUE (resident)
                const((hp, outp)),    const((1, outp)),      # fc2, gamma folded (resident)
            ],
            out_specs=pl.BlockSpec((tb, outp), lambda i: (i, 0)),
            compiler_params=pltpu.CompilerParams(
                dimension_semantics=("parallel",),   # v7x: shard batch tiles across both TCs
                vmem_limit_bytes=vmem_limit,
            ),
            cost_estimate=cost,
        )(x, w1, b1, wg, bg, w2, b2)

    try:
        out = jax.block_until_ready(_call(True))
    except Exception:
        # Older jax versions may reject single-buffered pipeline_mode; default buffering.
        out = jax.block_until_ready(_call(False))

    return out[:B, :out_dim]


# --------------------------------------------------------------------------- params
def init_params(key, in_dim, hidden_dim, out_dim):
    """PyTorch-style init; weights kept pre-transposed as (in_features, out_features)."""
    ks = jax.random.split(key, 4)

    def lin(k, fan_in, fan_out):
        bound = 1.0 / jnp.sqrt(fan_in)
        kw, kb = jax.random.split(k)
        w = jax.random.uniform(kw, (fan_in, fan_out), jnp.float32, -bound, bound)
        b = jax.random.uniform(kb, (fan_out,), jnp.float32, -bound, bound)
        return w, b

    w1, b1 = lin(ks[0], in_dim, hidden_dim)
    wga, bga = lin(ks[1], hidden_dim, hidden_dim)   # GLUE value branch
    wgb, bgb = lin(ks[2], hidden_dim, hidden_dim)   # GLUE gate branch
    w2, b2 = lin(ks[3], hidden_dim, out_dim)
    gamma = jnp.ones((hidden_dim,), jnp.float32)    # RMSNorm weight init = 1
    return dict(w1=w1, b1=b1, wga=wga, bga=bga, wgb=wgb, bgb=bgb,
                gamma=gamma, w2=w2, b2=b2)


def prepare_params(raw, *, dtype=jnp.float32):
    """Fuse / fold / lane-pad raw params into the kernel layout (one-time host transform).

    - GLUE value & gate projections concatenated into one (H, 2H) weight.
    - RMSNorm gamma folded into fc2: (g*s*gamma) @ W2 == (g*s) @ (diag(gamma) @ W2).
    - in/hidden/out dims zero-padded to multiples of 128 (exact: padded lanes of the
      gated activation are 0, padded rows/cols of weights are 0).
    - `dtype=jnp.bfloat16` stores *weights* bf16 (MXU rate / HBM-BW / VMEM wins) while
      biases stay f32 and the kernel still accumulates in f32.
    """
    in_dim, hidden = raw["w1"].shape
    out_dim = raw["w2"].shape[1]
    inp = _round_up(in_dim, _LANE)
    hp = _round_up(hidden, _LANE)
    outp = _round_up(out_dim, _LANE)

    def pad2(a, rows, cols):
        return jnp.pad(a, ((0, rows - a.shape[0]), (0, cols - a.shape[1])))

    w1 = pad2(raw["w1"], inp, hp)
    b1 = pad2(raw["b1"][None, :], 1, hp)

    wg = jnp.concatenate([pad2(raw["wga"], hp, hp), pad2(raw["wgb"], hp, hp)], axis=1)
    bg = jnp.concatenate([pad2(raw["bga"][None, :], 1, hp),
                          pad2(raw["bgb"][None, :], 1, hp)], axis=1)

    w2 = raw["gamma"][:, None] * raw["w2"]          # fold RMSNorm gamma into fc2
    w2 = pad2(w2, hp, outp)
    b2 = pad2(raw["b2"][None, :], 1, outp)

    cast_w = lambda a: a.astype(dtype)              # weights -> dtype, biases stay f32
    return dict(w1=cast_w(w1), b1=b1.astype(jnp.float32),
                wg=cast_w(wg), bg=bg.astype(jnp.float32),
                w2=cast_w(w2), b2=b2.astype(jnp.float32),
                in_dim=in_dim, hidden_dim=hidden, out_dim=out_dim)


# --------------------------------------------------------------------------- reference
def _reference(x, raw):
    h = x @ raw["w1"] + raw["b1"]
    a = h @ raw["wga"] + raw["bga"]
    b = h @ raw["wgb"] + raw["bgb"]
    g = a * jax.nn.sigmoid(b)
    n = g * jax.lax.rsqrt(jnp.mean(g * g, -1, keepdims=True) + 1e-6) * raw["gamma"]
    return n @ raw["w2"] + raw["b2"]


if __name__ == "__main__":
    key = jax.random.PRNGKey(0)
    kx, kp = jax.random.split(key)

    B, IN_DIM, HIDDEN, OUT_DIM = 200, 32, 64, 16   # B deliberately not a tile multiple
    x = jax.random.normal(kx, (B, IN_DIM), jnp.float32)

    raw = init_params(kp, IN_DIM, HIDDEN, OUT_DIM)
    params = prepare_params(raw, dtype=jnp.float32)   # use jnp.bfloat16 for large models

    out = dense_glue_rms_forward(x, params, block_rows=128)   # >=4 pipelined batch tiles
    out = jax.block_until_ready(out)

    ref = _reference(x, raw)
    assert out.shape == (B, OUT_DIM)
    assert jnp.allclose(out, ref, atol=1e-4, rtol=1e-4), float(jnp.max(jnp.abs(out - ref)))

    print("KERNEL_OK")
</pallas_src>

<mosaic_0001>
module attributes {stable_mosaic.version = 11 : i64} {
  func.func @_dense_glue_rms_kernel(%arg0: i32, %arg1: memref<56x128xf32, #tpu.memory_space<vmem>>, %arg2: memref<128x128xf32, #tpu.memory_space<vmem>>, %arg3: memref<1x128xf32, #tpu.memory_space<vmem>>, %arg4: memref<128x256xf32, #tpu.memory_space<vmem>>, %arg5: memref<1x256xf32, #tpu.memory_space<vmem>>, %arg6: memref<128x128xf32, #tpu.memory_space<vmem>>, %arg7: memref<1x128xf32, #tpu.memory_space<vmem>>, %arg8: memref<56x128xf32, #tpu.memory_space<vmem>>) attributes {dimension_semantics = [#tpu.dimension_semantics<parallel>], iteration_bounds = array<i64: 4>, scalar_prefetch = 0 : i64, scratch_operands = 0 : i64, tpu.core_type = #tpu.core_type<tc>, window_params = [{transform_indices = @transform_0, window_bounds = array<i64: 56, 128>}, {pipeline_mode = #tpu.pipeline_mode<synchronous>, transform_indices = @transform_1, window_bounds = array<i64: 128, 128>}, {pipeline_mode = #tpu.pipeline_mode<synchronous>, transform_indices = @transform_2, window_bounds = array<i64: 1, 128>}, {pipeline_mode = #tpu.pipeline_mode<synchronous>, transform_indices = @transform_3, window_bounds = array<i64: 128, 256>}, {pipeline_mode = #tpu.pipeline_mode<synchronous>, transform_indices = @transform_4, window_bounds = array<i64: 1, 256>}, {pipeline_mode = #tpu.pipeline_mode<synchronous>, transform_indices = @transform_5, window_bounds = array<i64: 128, 128>}, {pipeline_mode = #tpu.pipeline_mode<synchronous>, transform_indices = @transform_6, window_bounds = array<i64: 1, 128>}, {transform_indices = @transform_7, window_bounds = array<i64: 56, 128>}]} {
    %c0 = arith.constant 0 : index
    %c0_0 = arith.constant 0 : index
    %0 = vector.load %arg1[%c0, %c0_0] : memref<56x128xf32, #tpu.memory_space<vmem>>, vector<56x128xf32>
    %c0_1 = arith.constant 0 : index
    %c0_2 = arith.constant 0 : index
    %1 = vector.load %arg2[%c0_1, %c0_2] : memref<128x128xf32, #tpu.memory_space<vmem>>, vector<128x128xf32>
    %cst = arith.constant dense<0.000000e+00> : vector<56x128xf32>
    %2 = tpu.matmul %0, %1, %cst {dimension_numbers = #tpu.dot_dimension_numbers<[1], [0], [0], [1], [0, 0, 1, 1], [], []>} : vector<56x128xf32>, vector<128x128xf32>, vector<56x128xf32> -> vector<56x128xf32>
    %c0_3 = arith.constant 0 : index
    %c0_4 = arith.constant 0 : index
    %3 = vector.load %arg3[%c0_3, %c0_4] : memref<1x128xf32, #tpu.memory_space<vmem>>, vector<1x128xf32>
    %4 = vector.broadcast %3 : vector<1x128xf32> to vector<56x128xf32>
    %5 = arith.addf %2, %4 : vector<56x128xf32>
    %c0_5 = arith.constant 0 : index
    %c0_6 = arith.constant 0 : index
    %6 = vector.load %arg4[%c0_5, %c0_6] : memref<128x256xf32, #tpu.memory_space<vmem>>, vector<128x128xf32>
    %cst_7 = arith.constant dense<0.000000e+00> : vector<56x128xf32>
    %7 = tpu.matmul %5, %6, %cst_7 {dimension_numbers = #tpu.dot_dimension_numbers<[1], [0], [0], [1], [0, 0, 1, 1], [], []>} : vector<56x128xf32>, vector<128x128xf32>, vector<56x128xf32> -> vector<56x128xf32>
    %c0_8 = arith.constant 0 : index
    %c0_9 = arith.constant 0 : index
    %8 = vector.load %arg5[%c0_8, %c0_9] : memref<1x256xf32, #tpu.memory_space<vmem>>, vector<1x128xf32>
    %9 = vector.broadcast %8 : vector<1x128xf32> to vector<56x128xf32>
    %10 = arith.addf %7, %9 : vector<56x128xf32>
    %c0_10 = arith.constant 0 : index
    %c128 = arith.constant 128 : index
    %11 = vector.load %arg4[%c0_10, %c128] : memref<128x256xf32, #tpu.memory_space<vmem>>, vector<128x128xf32>
    %cst_11 = arith.constant dense<0.000000e+00> : vector<56x128xf32>
    %12 = tpu.matmul %5, %11, %cst_11 {dimension_numbers = #tpu.dot_dimension_numbers<[1], [0], [0], [1], [0, 0, 1, 1], [], []>} : vector<56x128xf32>, vector<128x128xf32>, vector<56x128xf32> -> vector<56x128xf32>
    %c0_12 = arith.constant 0 : index
    %c128_13 = arith.constant 128 : index
    %13 = vector.load %arg5[%c0_12, %c128_13] : memref<1x256xf32, #tpu.memory_space<vmem>>, vector<1x128xf32>
    %14 = vector.broadcast %13 : vector<1x128xf32> to vector<56x128xf32>
    %15 = arith.addf %12, %14 : vector<56x128xf32>
    %16 = arith.negf %15 : vector<56x128xf32>
    %17 = math.exp %16 : vector<56x128xf32>
    %cst_14 = arith.constant 1.000000e+00 : f32
    %18 = vector.broadcast %cst_14 : f32 to vector<56x128xf32>
    %19 = arith.addf %18, %17 : vector<56x128xf32>
    %20 = arith.divf %18, %19 : vector<56x128xf32>
    %21 = arith.mulf %10, %20 : vector<56x128xf32>
    %22 = arith.mulf %21, %21 : vector<56x128xf32>
    %cst_15 = arith.constant dense<0.000000e+00> : vector<56xf32>
    %23 = vector.multi_reduction <add>, %22, %cst_15 [1] : vector<56x128xf32> to vector<56xf32>
    %24 = vector.shape_cast %23 : vector<56xf32> to vector<56x1xf32>
    %cst_16 = arith.constant 1.562500e-02 : f32
    %25 = vector.broadcast %cst_16 : f32 to vector<56x1xf32>
    %26 = arith.mulf %24, %25 : vector<56x1xf32>
    %cst_17 = arith.constant 9.99999997E-7 : f32
    %27 = vector.broadcast %cst_17 : f32 to vector<56x1xf32>
    %28 = arith.addf %26, %27 : vector<56x1xf32>
    %29 = math.rsqrt %28 : vector<56x1xf32>
    %30 = vector.broadcast %29 : vector<56x1xf32> to vector<56x128xf32>
    %31 = arith.mulf %21, %30 : vector<56x128xf32>
    %c0_18 = arith.constant 0 : index
    %c0_19 = arith.constant 0 : index
    %32 = vector.load %arg6[%c0_18, %c0_19] : memref<128x128xf32, #tpu.memory_space<vmem>>, vector<128x128xf32>
    %cst_20 = arith.constant dense<0.000000e+00> : vector<56x128xf32>
    %33 = tpu.matmul %31, %32, %cst_20 {dimension_numbers = #tpu.dot_dimension_numbers<[1], [0], [0], [1], [0, 0, 1, 1], [], []>} : vector<56x128xf32>, vector<128x128xf32>, vector<56x128xf32> -> vector<56x128xf32>
    %c0_21 = arith.constant 0 : index
    %c0_22 = arith.constant 0 : index
    %34 = vector.load %arg7[%c0_21, %c0_22] : memref<1x128xf32, #tpu.memory_space<vmem>>, vector<1x128xf32>
    %35 = vector.broadcast %34 : vector<1x128xf32> to vector<56x128xf32>
    %36 = arith.addf %33, %35 : vector<56x128xf32>
    %c0_23 = arith.constant 0 : index
    %c0_24 = arith.constant 0 : index
    %37 = vector.load %arg8[%c0_23, %c0_24] : memref<56x128xf32, #tpu.memory_space<vmem>>, vector<56x128xf32>
    tpu.vector_store %arg8[%c0_23, %c0_24], %36 {strides = array<i32>} : memref<56x128xf32, #tpu.memory_space<vmem>>, vector<56x128xf32>,
    return
  }
  func.func @transform_0(%arg0: i32) -> (i32, i32) {
    %c0_i32 = arith.constant 0 : i32
    %c0_i32_0 = arith.constant 0 : i32
    return %arg0, %c0_i32 : i32, i32
  }
  func.func @transform_1(%arg0: i32) -> (i32, i32) {
    %c0_i32 = arith.constant 0 : i32
    %c0_i32_0 = arith.constant 0 : i32
    %c0_i32_1 = arith.constant 0 : i32
    return %c0_i32, %c0_i32_0 : i32, i32
  }
  func.func @transform_2(%arg0: i32) -> (i32, i32) {
    %c0_i32 = arith.constant 0 : i32
    %c0_i32_0 = arith.constant 0 : i32
    %c0_i32_1 = arith.constant 0 : i32
    return %c0_i32, %c0_i32_0 : i32, i32
  }
  func.func @transform_3(%arg0: i32) -> (i32, i32) {
    %c0_i32 = arith.constant 0 : i32
    %c0_i32_0 = arith.constant 0 : i32
    %c0_i32_1 = arith.constant 0 : i32
    return %c0_i32, %c0_i32_0 : i32, i32
  }
  func.func @transform_4(%arg0: i32) -> (i32, i32) {
    %c0_i32 = arith.constant 0 : i32
    %c0_i32_0 = arith.constant 0 : i32
    %c0_i32_1 = arith.constant 0 : i32
    return %c0_i32, %c0_i32_0 : i32, i32
  }
  func.func @transform_5(%arg0: i32) -> (i32, i32) {
    %c0_i32 = arith.constant 0 : i32
    %c0_i32_0 = arith.constant 0 : i32
    %c0_i32_1 = arith.constant 0 : i32
    return %c0_i32, %c0_i32_0 : i32, i32
  }
  func.func @transform_6(%arg0: i32) -> (i32, i32) {
    %c0_i32 = arith.constant 0 : i32
    %c0_i32_0 = arith.constant 0 : i32
    %c0_i32_1 = arith.constant 0 : i32
    return %c0_i32, %c0_i32_0 : i32, i32
  }
  func.func @transform_7(%arg0: i32) -> (i32, i32) {
    %c0_i32 = arith.constant 0 : i32
    %c0_i32_0 = arith.constant 0 : i32
    return %arg0, %c0_i32 : i32, i32
  }
}

module attributes {stable_mosaic.version = 11 : i64} {
  func.func @_dense_glue_rms_kernel(%arg0: i32, %arg1: memref<56x128xf32, #tpu.memory_space<vmem>>, %arg2: memref<128x128xf32, #tpu.memory_space<vmem>>, %arg3: memref<1x128xf32, #tpu.memory_space<vmem>>, %arg4: memref<128x256xf32, #tpu.memory_space<vmem>>, %arg5: memref<1x256xf32, #tpu.memory_space<vmem>>, %arg6: memref<128x128xf32, #tpu.memory_space<vmem>>, %arg7: memref<1x128xf32, #tpu.memory_space<vmem>>, %arg8: memref<56x128xf32, #tpu.memory_space<vmem>>) attributes {dimension_semantics = [#tpu.dimension_semantics<parallel>], iteration_bounds = array<i64: 4>, scalar_prefetch = 0 : i64, scratch_operands = 0 : i64, tpu.core_type = #tpu.core_type<tc>, window_params = [{transform_indices = @transform_0, window_bounds = array<i64: 56, 128>}, {pipeline_mode = #tpu.pipeline_mode<synchronous>, transform_indices = @transform_1, window_bounds = array<i64: 128, 128>}, {pipeline_mode = #tpu.pipeline_mode<synchronous>, transform_indices = @transform_2, window_bounds = array<i64: 1, 128>}, {pipeline_mode = #tpu.pipeline_mode<synchronous>, transform_indices = @transform_3, window_bounds = array<i64: 128, 256>}, {pipeline_mode = #tpu.pipeline_mode<synchronous>, transform_indices = @transform_4, window_bounds = array<i64: 1, 256>}, {pipeline_mode = #tpu.pipeline_mode<synchronous>, transform_indices = @transform_5, window_bounds = array<i64: 128, 128>}, {pipeline_mode = #tpu.pipeline_mode<synchronous>, transform_indices = @transform_6, window_bounds = array<i64: 1, 128>}, {transform_indices = @transform_7, window_bounds = array<i64: 56, 128>}]} {
    %c0 = arith.constant 0 : index
    %c0_0 = arith.constant 0 : index
    %0 = vector.load %arg1[%c0, %c0_0] : memref<56x128xf32, #tpu.memory_space<vmem>>, vector<56x128xf32>
    %c0_1 = arith.constant 0 : index
    %c0_2 = arith.constant 0 : index
    %1 = vector.load %arg2[%c0_1, %c0_2] : memref<128x128xf32, #tpu.memory_space<vmem>>, vector<128x128xf32>
    %cst = arith.constant dense<0.000000e+00> : vector<56x128xf32>
    %2 = tpu.matmul %0, %1, %cst {dimension_numbers = #tpu.dot_dimension_numbers<[1], [0], [0], [1], [0, 0, 1, 1], [], []>} : vector<56x128xf32>, vector<128x128xf32>, vector<56x128xf32> -> vector<56x128xf32>
    %c0_3 = arith.constant 0 : index
    %c0_4 = arith.constant 0 : index
    %3 = vector.load %arg3[%c0_3, %c0_4] : memref<1x128xf32, #tpu.memory_space<vmem>>, vector<1x128xf32>
    %4 = vector.broadcast %3 : vector<1x128xf32> to vector<56x128xf32>
    %5 = arith.addf %2, %4 : vector<56x128xf32>
    %c0_5 = arith.constant 0 : index
    %c0_6 = arith.constant 0 : index
    %6 = vector.load %arg4[%c0_5, %c0_6] : memref<128x256xf32, #tpu.memory_space<vmem>>, vector<128x128xf32>
    %cst_7 = arith.constant dense<0.000000e+00> : vector<56x128xf32>
    %7 = tpu.matmul %5, %6, %cst_7 {dimension_numbers = #tpu.dot_dimension_numbers<[1], [0], [0], [1], [0, 0, 1, 1], [], []>} : vector<56x128xf32>, vector<128x128xf32>, vector<56x128xf32> -> vector<56x128xf32>
    %c0_8 = arith.constant 0 : index
    %c0_9 = arith.constant 0 : index
    %8 = vector.load %arg5[%c0_8, %c0_9] : memref<1x256xf32, #tpu.memory_space<vmem>>, vector<1x128xf32>
    %9 = vector.broadcast %8 : vector<1x128xf32> to vector<56x128xf32>
    %10 = arith.addf %7, %9 : vector<56x128xf32>
    %c0_10 = arith.constant 0 : index
    %c128 = arith.constant 128 : index
    %11 = vector.load %arg4[%c0_10, %c128] : memref<128x256xf32, #tpu.memory_space<vmem>>, vector<128x128xf32>
    %cst_11 = arith.constant dense<0.000000e+00> : vector<56x128xf32>
    %12 = tpu.matmul %5, %11, %cst_11 {dimension_numbers = #tpu.dot_dimension_numbers<[1], [0], [0], [1], [0, 0, 1, 1], [], []>} : vector<56x128xf32>, vector<128x128xf32>, vector<56x128xf32> -> vector<56x128xf32>
    %c0_12 = arith.constant 0 : index
    %c128_13 = arith.constant 128 : index
    %13 = vector.load %arg5[%c0_12, %c128_13] : memref<1x256xf32, #tpu.memory_space<vmem>>, vector<1x128xf32>
    %14 = vector.broadcast %13 : vector<1x128xf32> to vector<56x128xf32>
    %15 = arith.addf %12, %14 : vector<56x128xf32>
    %16 = arith.negf %15 : vector<56x128xf32>
    %17 = math.exp %16 : vector<56x128xf32>
    %cst_14 = arith.constant 1.000000e+00 : f32
    %18 = vector.broadcast %cst_14 : f32 to vector<56x128xf32>
    %19 = arith.addf %18, %17 : vector<56x128xf32>
    %20 = arith.divf %18, %19 : vector<56x128xf32>
    %21 = arith.mulf %10, %20 : vector<56x128xf32>
    %22 = arith.mulf %21, %21 : vector<56x128xf32>
    %cst_15 = arith.constant dense<0.000000e+00> : vector<56xf32>
    %23 = vector.multi_reduction <add>, %22, %cst_15 [1] : vector<56x128xf32> to vector<56xf32>
    %24 = vector.shape_cast %23 : vector<56xf32> to vector<56x1xf32>
    %cst_16 = arith.constant 1.562500e-02 : f32
    %25 = vector.broadcast %cst_16 : f32 to vector<56x1xf32>
    %26 = arith.mulf %24, %25 : vector<56x1xf32>
    %cst_17 = arith.constant 9.99999997E-7 : f32
    %27 = vector.broadcast %cst_17 : f32 to vector<56x1xf32>
    %28 = arith.addf %26, %27 : vector<56x1xf32>
    %29 = math.rsqrt %28 : vector<56x1xf32>
    %30 = vector.broadcast %29 : vector<56x1xf32> to vector<56x128xf32>
    %31 = arith.mulf %21, %30 : vector<56x128xf32>
    %c0_18 = arith.constant 0 : index
    %c0_19 = arith.constant 0 : index
    %32 = vector.load %arg6[%c0_18, %c0_19] : memref<128x128xf32, #tpu.memory_space<vmem>>, vector<128x128xf32>
    %cst_20 = arith.constant dense<0.000000e+00> : vector<56x128xf32>
    %33 = tpu.matmul %31, %32, %cst_20 {dimension_numbers = #tpu.dot_dimension_numbers<[1], [0], [0], [1], [0, 0, 1, 1], [], []>} : vector<56x128xf32>, vector<128x128xf32>, vector<56x128xf32> -> vector<56x128xf32>
    %c0_21 = arith.constant 0 : index
    %c0_22 = arith.constant 0 : index
    %34 = vector.load %arg7[%c0_21, %c0_22] : memref<1x128xf32, #tpu.memory_space<vmem>>, vector<1x128xf32>
    %35 = vector.broadcast %34 : vector<1x128xf32> to vector<56x128xf32>
    %36 = arith.addf %33, %35 : vector<56x128xf32>
    %c0_23 = arith.constant 0 : index
    %c0_24 = arith.constant 0 : index
    %37 = vector.load %arg8[%c0_23, %c0_24] : memref<56x128xf32, #tpu.memory_space<vmem>>, vector<56x128xf32>
    tpu.vector_store %arg8[%c0_23, %c0_24], %36 {strides = array<i32>} : memref<56x128xf32, #tpu.memory_space<vmem>>, vector<56x128xf32>,
    return
  }
  func.func @transform_0(%arg0: i32) -> (i32, i32) {
    %c0_i32 = arith.constant 0 : i32
    %c0_i32_0 = arith.constant 0 : i32
    return %arg0, %c0_i32 : i32, i32
  }
  func.func @transform_1(%arg0: i32) -> (i32, i32) {
    %c0_i32 = arith.constant 0 : i32
    %c0_i32_0 = arith.constant 0 : i32
    %c0_i32_1 = arith.constant 0 : i32
    return %c0_i32, %c0_i32_0 : i32, i32
  }
  func.func @transform_2(%arg0: i32) -> (i32, i32) {
    %c0_i32 = arith.constant 0 : i32
    %c0_i32_0 = arith.constant 0 : i32
    %c0_i32_1 = arith.constant 0 : i32
    return %c0_i32, %c0_i32_0 : i32, i32
  }
  func.func @transform_3(%arg0: i32) -> (i32, i32) {
    %c0_i32 = arith.constant 0 : i32
    %c0_i32_0 = arith.constant 0 : i32
    %c0_i32_1 = arith.constant 0 : i32
    return %c0_i32, %c0_i32_0 : i32, i32
  }
  func.func @transform_4(%arg0: i32) -> (i32, i32) {
    %c0_i32 = arith.constant 0 : i32
    %c0_i32_0 = arith.constant 0 : i32
    %c0_i32_1 = arith.constant 0 : i32
    return %c0_i32, %c0_i32_0 : i32, i32
  }
  func.func @transform_5(%arg0: i32) -> (i32, i32) {
    %c0_i32 = arith.constant 0 : i32
    %c0_i32_0 = arith.constant 0 : i32
    %c0_i32_1 = arith.constant 0 : i32
    return %c0_i32, %c0_i32_0 : i32, i32
  }
  func.func @transform_6(%arg0: i32) -> (i32, i32) {
    %c0_i32 = arith.constant 0 : i32
    %c0_i32_0 = arith.constant 0 : i32
    %c0_i32_1 = arith.constant 0 : i32
    return %c0_i32, %c0_i32_0 : i32, i32
  }
  func.func @transform_7(%arg0: i32) -> (i32, i32) {
    %c0_i32 = arith.constant 0 : i32
    %c0_i32_0 = arith.constant 0 : i32
    return %arg0, %c0_i32 : i32, i32
  }
}

</mosaic_0001>

<bundles_post_ra>
// kernel: tpu_custom_call.1
= control target key start
LH: loop header
LB: loop body
LE: loop exit
PB: predicated region body
PF: predicated region fallthrough
CT: control target
= control target key end

     0   :  { %s2268_s0 = inlined_call_operand.hbm [shape: f32[224,128], index: 0, kind: input, shape index: {}]   ;;  %s2269_s1 = inlined_call_operand.hbm [shape: f32[128,128], index: 1, kind: input, shape index: {}]   ;;  %s2270_s2 = inlined_call_operand.vmem [shape: f32[1,128], index: 2, kind: input, shape index: {}]   ;;  %s2271_s3 = inlined_call_operand.hbm [shape: f32[128,256], index: 3, kind: input, shape index: {}]   ;;  %s2272_s4 = inlined_call_operand.vmem [shape: f32[1,256], index: 4, kind: input, shape index: {}]   ;;  %s2273_s5 = inlined_call_operand.hbm [shape: f32[128,128], index: 5, kind: input, shape index: {}]   ;;  %s2274_s6 = inlined_call_operand.vmem [shape: f32[1,128], index: 6, kind: input, shape index: {}]   ;;  %s2275_s7 = inlined_call_operand.hbm [shape: f32[224,128], index: 7, kind: output, shape index: {}]  }
   0x1   :  { %2284 = sst [smem:[#allocation16_spill]] %s2269_s1 }
   0x2   :  { %2285 = sst [smem:[#allocation17_spill]] %s2271_s3 }
   0x3   :  { %12 = vsyncpa [#allocation3], 0 }
   0x4   :  { %14 = vsyncpa [#allocation3 + $0x1], 0 }
   0x5   :  { %15 = vsyncpa [#allocation6], 0 }
   0x6   :  { %16 = vsyncpa [#allocation9], 0 }
   0x7   :  { %17 = vsyncpa [#allocation4], 0 }
   0x8   :  { %19 = vsyncpa [#allocation4 + $0x1], 0  ;;  %s1864_s24 = smov 0   ;;  %s1866_s25 = smov 0  }
   0x9   :  { %s1868_s26 = smov 0   ;;  %s1870_s27 = smov 0  }
   0xa LB: > { %s1885_s28 = sadd.s32 4294967295, %s1808_s27   ;;  %s1063_s29 = sadd.s32 4294967294, %s1808_s27   ;;  %s1808_s27 = sphi %s1870_s27, %s2310_s27   ;;  %s1804_s26 = sphi %s1868_s26, %s2309_s26   ;;  %s1800_s25 = sphi %s1866_s25, %s2308_s25   ;;  %s1796_s24 = sphi %s1864_s24, %s2307_s24  }
   0xb   : > { %p45_p0 = scmp.ne.s32.totalorder %s1800_s25, %s1796_s24  ;;  %p2276_p1 = scmp.eq.s32.totalorder %s1885_s28, 0 }
   0xc   : > { %p201_p3 = scmp.eq.s32.totalorder %s1063_s29, 3  ;;  %p1064_p5 = scmp.ge.s32.totalorder %s1808_s27, 1 }
   0xd   : > { %p1894_p4 = por %p2276_p1, %p45_p0  ;;  %p208_p7 = scmp.lt.s32.totalorder %s1808_s27, 5 }
   0xe   : > { %p1899_p6 = por %p201_p3, %p45_p0  ;;  %s1810_s10 = smov [#allocation5]  }
   0xf   : > { %s2286_s30 = scalar_select %p1894_p4, 1, 0 }
  0x10   : > { %s2287_s8 = scalar_select %p1899_p6, 1, 0 }
  0x11   : > { %p1904_p8 = pnand %p1064_p5, %p208_p7  ;;  %s220_s11 = sshll.u32 %s1810_s10, 4  ;;  %s221_s11 = int_to_ptr.vmem [resolvable:$true] %s220_s11 }
  0x12   : > { %2288 = sst [smem:[#allocation15_spill]] %s2287_s8  ;;  %s1811_s13 = smov [#allocation7]  }
  0x13   : > { %s2289_s9 = scalar_select %p1904_p8, 1, 0 }
  0x14   : > { %p1508_p9 = pneg %p1904_p8  ;;  %s236_s14 = sshll.u32 %s1811_s13, 4  ;;  %s1916_s14 = int_to_ptr.vmem [resolvable:$true] %s236_s14 }
  0x15   : > { %s2291_s1 = sld [smem:[#allocation16_spill]] }
  0x16   : > { %p1912_p10 = pnand %p1508_p9, %p2276_p1 }
  0x18   : > { %p1926_p12 = pneg %p1912_p10 }
  0x1b   : > { %s1620_s17 = scalar_lea.hbm %s2291_s1, 2048 }
  0x1c   : > { %p1621_p11 = scmp.ne.s32.totalorder %s2291_s1, %s1620_s17  ;;  %p1627_p3 = scmp.lt.u32.totalorder %s1620_s17, %s2291_s1 }
  0x1e   : > { %p1623_p13 = pnand %p1926_p12, %p1621_p11 }
  0x20   : > { %p1624_p0 = pneg %p1623_p13 }
  0x22   : > { %p1629_p5 = pnand %p1627_p3, %p1624_p0 }
  0x24   : > { %1632 = shalt.err (!%p1629_p5)
}
  0x25   : > { %s1633_s23 = scalar_lea.vmem %s221_s11, 2048  ;;  %p1641_p2 = scmp.lt.s32.totalorder %s221_s11, %s221_s11 }
  0x26   : > { %p1634_p7 = scmp.ne.s32.totalorder %s221_s11, %s1633_s23  ;;  %p1642_p6 = scmp.lt.s32.totalorder %s1633_s23, %s1633_s23 }
  0x28   : > { %p1636_p9 = pnand %p1634_p7, %p1926_p12  ;;  %p1643_p4 = por %p1642_p6, %p1641_p2 }
  0x2a   : > { %p1637_p1 = pneg %p1636_p9 }
  0x2c   : > { %p1644_p8 = pnand %p1643_p4, %p1637_p1 }
  0x2e   : > { %1647 = shalt.err (!%p1644_p8)
}
  0x2f   : > { %s2279_s29 = smov 128   ;;  %s2281_s10 = smov 8  }
  0x30   : > { %1511 = dma.hbm_to_vmem [thread:$0]  (!%p1912_p10), %s2291_s1, 2048, %s221_s11, [#allocation6], %s2279_s29, %s2279_s29, %s2281_s10  }
  0x31   : > { %s2293_s3 = sld [smem:[#allocation17_spill]] }
  0x37   : > { %s1648_s18 = scalar_lea.hbm %s2293_s3, 4096 }
  0x38   : > { %p1649_p1 = scmp.ne.s32.totalorder %s2293_s3, %s1648_s18  ;;  %p1655_p6 = scmp.lt.u32.totalorder %s1648_s18, %s2293_s3 }
  0x3a   : > { %p1651_p2 = pnand %p1649_p1, %p1926_p12 }
  0x3c   : > { %p1652_p4 = pneg %p1651_p2 }
  0x3e   : > { %p1657_p8 = pnand %p1655_p6, %p1652_p4 }
  0x40   : > { %1660 = shalt.err (!%p1657_p8)
}
  0x41   : > { %s1661_s11 = scalar_lea.vmem %s1916_s14, 4096  ;;  %p1669_p3 = scmp.lt.s32.totalorder %s1916_s14, %s1916_s14 }
  0x42   : > { %p1662_p11 = scmp.ne.s32.totalorder %s1916_s14, %s1661_s11  ;;  %p1670_p5 = scmp.lt.s32.totalorder %s1661_s11, %s1661_s11 }
  0x44   : > { %p1664_p13 = pnand %p1662_p11, %p1926_p12  ;;  %p1671_p7 = por %p1670_p5, %p1669_p3 }
  0x46   : > { %p1665_p0 = pneg %p1664_p13 }
  0x48   : > { %p1672_p9 = pnand %p1671_p7, %p1665_p0 }
  0x4a   : > { %1675 = shalt.err (!%p1672_p9)
}
  0x4b   : > { %s1814_s13 = smov 256   ;;  %s1815_s15 = smov 16  }
  0x4c   : > { %1514 = dma.hbm_to_vmem [thread:$0]  (!%p1912_p10), %s2293_s3, 4096, %s1916_s14, [#allocation6], %s1814_s13, %s1814_s13, %s1815_s15  }
  0x4d   : > { %s1816_s18 = smov [#allocation8]   ;;  %s1969_s21 = sadd.s32 1, %s1808_s27  }
  0x4e   : > { %s252_s19 = sshll.u32 %s1816_s18, 4  ;;  %s1676_s11 = scalar_lea.hbm %s2273_s5, 2048  ;;  %s253_s19 = int_to_ptr.vmem [resolvable:$true] %s252_s19 }
  0x4f   : > { %p1677_p1 = scmp.ne.s32.totalorder %s2273_s5, %s1676_s11  ;;  %p1683_p6 = scmp.lt.u32.totalorder %s1676_s11, %s2273_s5 }
  0x51   : > { %p1679_p2 = pnand %p1677_p1, %p1926_p12 }
  0x53   : > { %p1680_p4 = pneg %p1679_p2 }
  0x55   : > { %p1685_p8 = pnand %p1683_p6, %p1680_p4 }
  0x57   : > { %1688 = shalt.err (!%p1685_p8)
}
  0x58   : > { %s1689_s14 = scalar_lea.vmem %s253_s19, 2048  ;;  %p1697_p3 = scmp.lt.s32.totalorder %s253_s19, %s253_s19 }
  0x59   : > { %p1690_p11 = scmp.ne.s32.totalorder %s253_s19, %s1689_s14  ;;  %p1698_p5 = scmp.lt.s32.totalorder %s1689_s14, %s1689_s14 }
  0x5b   : > { %p1692_p13 = pnand %p1690_p11, %p1926_p12  ;;  %p1699_p7 = por %p1698_p5, %p1697_p3 }
  0x5d   : > { %p1693_p0 = pneg %p1692_p13 }
  0x5f   : > { %p1700_p9 = pnand %p1699_p7, %p1693_p0 }
  0x61   : > { %1703 = shalt.err (!%p1700_p9)
}
  0x62   : > { %s2294_s29 = smov 8   ;;  %s2295_s10 = smov 128  }
  0x63   : > { %1517 = dma.hbm_to_vmem [thread:$0]  (!%p1912_p10), %s2273_s5, 2048, %s253_s19, [#allocation9], %s2295_s10, %s2295_s10, %s2294_s29  }
  0x64   : > { %s29_s20 = ssub.s32 %s1808_s27, %s1969_s21  ;;  %s32_s12 = sadd.s32 1, %s1804_s26 }
  0x65   : > { %p30_p12 = scmp.eq.s32.totalorder %s29_s20, 0  ;;  %p39_p1 = scmp.ne.s32.totalorder %s1804_s26, %s1800_s25 }
  0x66   : > { %p40_p2 = scmp.eq.s32.totalorder %s1808_s27, 0  ;;  %p1529_p4 = scmp.lt.s32.totalorder %s1808_s27, 4 }
  0x67   : > { %s2000_s13 = scalar_select %p30_p12, %s1804_s26, %s32_s12  }
  0x68   : > { %p41_p6 = por %p40_p2, %p39_p1  ;;  %p2296_p8 = scmp.eq.s32.totalorder %s1885_s28, 3 }
  0x69   : > { %s269_s16 = sand.u32 1, %s1804_s26   ;;  %s1088_s17 = smul.u32 896, %s1808_s27 }
  0x6a   : > { %p2004_p11 = por %p2296_p8, %p39_p1  ;;  %s1490_s18 = smul.u32 56, %s269_s16 }
  0x6b   : > { %p2010_p13 = pnand %p1529_p4, %p41_p6  ;;  %s2017_s11 = scalar_lea.hbm %s2268_s0, %s1088_s17 }
  0x6c   : > { %s273_s14 = scalar_lea.vmem [#allocation2], %s1490_s18  ;;  %s2021_s8 = scalar_lea.sflag [#allocation3], %s269_s16 }
  0x6d   : > { %s280_s1 = sshll.u32 %s273_s14, 4  ;;  %s1704_s20 = scalar_lea.hbm %s2017_s11, 896  ;;  %s2019_s1 = int_to_ptr.vmem [resolvable:$true] %s280_s1 }
  0x6e   : > { %p1705_p10 = scmp.ne.s32.totalorder %s2017_s11, %s1704_s20  ;;  %p1706_p0 = pneg %p2010_p13 }
  0x6f   : > { %s1709_s19 = scalar_lea.hbm %s2268_s0, 3584  ;;  %p1710_p7 = scmp.lt.u32.totalorder %s2017_s11, %s2268_s0 }
  0x70   : > { %p1707_p3 = pnand %p1706_p0, %p1705_p10  ;;  %p1711_p9 = scmp.lt.u32.totalorder %s1709_s19, %s1704_s20 }
  0x71   : > { %p1713_p1 = scmp.lt.u32.totalorder %s1704_s20, %s2017_s11 }
  0x72   : > { %p1708_p5 = pneg %p1707_p3  ;;  %p1712_p12 = por %p1711_p9, %p1710_p7 }
  0x74   : > { %p1714_p2 = por %p1713_p1, %p1712_p12 }
  0x76   : > { %p1715_p4 = pnand %p1714_p2, %p1708_p5 }
  0x78   : > { %1718 = shalt.err (!%p1715_p4)
}
  0x79   : > { %s1719_s16 = scalar_lea.vmem %s2019_s1, 896  ;;  %s1817_s18 = smov [#allocation2]  }
  0x7a   : > { %p1720_p6 = scmp.ne.s32.totalorder %s2019_s1, %s1719_s16  ;;  %s1724_s14 = sshll.u32 %s1817_s18, 4  ;;  %s1725_s14 = int_to_ptr.vmem [resolvable:$false] %s1724_s14 }
  0x7b   : > { %s1726_s3 = scalar_lea.vmem %s1725_s14, 1792  ;;  %p1727_p3 = scmp.lt.s32.totalorder %s2019_s1, %s1725_s14 }
  0x7c   : > { %p1722_p8 = pnand %p1720_p6, %p1706_p0  ;;  %p1728_p7 = scmp.lt.s32.totalorder %s1726_s3, %s1719_s16 }
  0x7e   : > { %p1723_p10 = pneg %p1722_p8  ;;  %p1729_p9 = por %p1728_p7, %p1727_p3 }
  0x80   : > { %p1730_p12 = pnand %p1729_p9, %p1723_p10 }
  0x82   : > { %1733 = shalt.err (!%p1730_p12)
}
  0x83   : > { %1521 = dma.hbm_to_vmem [thread:$0]  (!%p2010_p13), %s2017_s11, 896, %s2019_s1, %s2021_s8, %s2295_s10, %s2295_s10, %s2294_s29  }
  0x84   : > { %p2299_p0 = scmp.ne.s32.totalorder %s2289_s9, 0 }
  0x85   : > { %s2055_s20 = sand.u32 (!%p2299_p0), 1, %s1800_s25   ;;  %p2300_p5 = scmp.ne.s32.totalorder (!%p2299_p0), %s2286_s30, 0 }
  0x86   : > { %292 = sbr.rel (%p2299_p0) target bundleno = 1054 (0x41e), region = 48  ;;  %s295_s17 = scalar_lea.sflag (!%p2299_p0), [#allocation3], %s2055_s20 }
  0x87   : > { %s1491_s12 = smul.u32 (!%p2299_p0), 56, %s2055_s20 }
  0x89   : > { %s2061_s22 = scalar_lea.vmem (!%p2299_p0), [#allocation2], %s1491_s12 }
  0x8d   : > { %1779 = dma.done.wait (%p2300_p5), %s295_s17, 896  }
  0x8e   : > { %1781 = vsyncadd (%p2300_p5), %s295_s17, 4294966400  ;;  %p2301_p13 = scmp.eq.s32.totalorder %s1885_s28, 0 }
  0x90   : > { %1783 = dma.done.wait (%p2301_p13), [#allocation6], 6144   ;;  %p2302_p1 = pmov %p2301_p13 }
  0x92   : > { %1785 = vsyncadd (%p2302_p1), [#allocation6], 4294961152  ;;  %p2303_p2 = pmov %p2302_p1 }
  0x93   : > { %p2304_p4 = pmov %p2302_p1 }
  0x94   : > { %1787 = dma.done.wait (%p2303_p2), [#allocation9], 2048  }
  0x95   : > { %1789 = vsyncadd (%p2304_p4), [#allocation9], 4294965248  ;;  %v1818_v0 = vmov 0.0|0.0   ;;  %vm1819_vm0 = vmmov 0   ;;  %v1820_v1 = vmov 0.0   ;;  %v350_v2 = vld [vmem:[#allocation5] sm:$0xff] }
  0x96   : > { %1394 = vmatprep.subr.bf16.mxu0 %v1818_v0  ;;  %1214 = vmatprep.mubr.msk.f32.mxu0 %vm1819_vm0, %v1820_v1  ;;  %v351_v3 = vld [vmem:[#allocation5 + $0x8] sm:$0xff]  ;;  %v352_v4 = vld [vmem:[#allocation5 + $0x10] sm:$0xff]  ;;  %v353_v6 = vld [vmem:[#allocation5 + $0x18] sm:$0xff]  ;;  %s340_s23 = scalar_lea.vmem [#allocation10], %s1491_s12  ;;  %s1089_s18 = smul.u32 896, %s1885_s28 }
  0x97   : > { %1418 = vmatprep.subr.bf16.mxu1 %v1818_v0  ;;  %1267 = vmatprep.mubr.msk.f32.mxu1 %vm1819_vm0, %v1820_v1  ;;  %v1395_v5 = vpack.c.bf16 %v351_v3, %v350_v2  ;;  %v1398_v7 = vpack.c.bf16 %v353_v6, %v352_v4  ;;  %v354_v8 = vld [vmem:[#allocation5 + $0x20] sm:$0xff]  ;;  %v355_v9 = vld [vmem:[#allocation5 + $0x28] sm:$0xff]  ;;  %v356_v12 = vld [vmem:[#allocation5 + $0x30] sm:$0xff]  ;;  %s961_s16 = sshll.u32 %s340_s23, 4  ;;  %s948_s17 = scalar_lea.sflag [#allocation4], %s2055_s20  ;;  %s2220_s16 = int_to_ptr.vmem [resolvable:$true] %s961_s16 }
  0x98   : > { %v1401_v10 = vpack.c.bf16 %v355_v9, %v354_v8  ;;  %v473_v11 = vld [vmem:[#allocation7] sm:$0xff]  ;;  %v357_v13 = vld [vmem:[#allocation5 + $0x38] sm:$0xff]  ;;  %v474_v14 = vld [vmem:[#allocation7 + $0x10] sm:$0xff]  ;;  %s2225_s12 = scalar_lea.hbm %s2275_s7, %s1089_s18  ;;  %s1821_s28 = smov [#allocation10]  }
  0x99   : > { %1396 = vmatpush3.bf16.msra.mxu0 %v1395_v5  ;;  %v1419_v15 = vpack.c.bf16 %v474_v14, %v473_v11  ;;  %v475_v16 = vld [vmem:[#allocation7 + $0x20] sm:$0xff]  ;;  %v476_v17 = vld [vmem:[#allocation7 + $0x30] sm:$0xff]  ;;  %v1404_v18 = vpack.c.bf16 %v357_v13, %v356_v12  ;;  %v359_v21 = vld [vmem:[#allocation5 + $0x48] sm:$0xff]  ;;  %s1738_s30 = sshll.u32 %s1821_s28, 4  ;;  %s1739_s30 = int_to_ptr.vmem [resolvable:$false] %s1738_s30 }
  0x9a   : > { %1397 = vmatprep.subr.bf16.mxu0 %v1818_v0  ;;  %v358_v19 = vld [vmem:[#allocation5 + $0x40] sm:$0xff]  ;;  %v1422_v20 = vpack.c.bf16 %v476_v17, %v475_v16  ;;  %v478_v23 = vld [vmem:[#allocation7 + $0x50] sm:$0xff]  ;;  %v361_v27 = vld [vmem:[#allocation5 + $0x58] sm:$0xff]  ;;  %s1740_s9 = scalar_lea.vmem %s1739_s30, 1792  ;;  %p1741_p3 = scmp.lt.s32.totalorder %s2220_s16, %s1739_s30 }
  0x9b   : > { %1420 = vmatpush3.bf16.msra.mxu1 %v1419_v15  ;;  %v477_v22 = vld [vmem:[#allocation7 + $0x40] sm:$0xff]  ;;  %v1407_v24 = vpack.c.bf16 %v359_v21, %v358_v19  ;;  %v360_v25 = vld [vmem:[#allocation5 + $0x50] sm:$0xff]  ;;  %v363_v33 = vld [vmem:[#allocation5 + $0x68] sm:$0xff] }
  0x9c   : > { %1421 = vmatprep.subr.bf16.mxu1 %v1818_v0  ;;  %v1425_v26 = vpack.c.bf16 %v478_v23, %v477_v22  ;;  %v479_v28 = vld [vmem:[#allocation7 + $0x60] sm:$0xff]  ;;  %v480_v29 = vld [vmem:[#allocation7 + $0x70] sm:$0xff]  ;;  %v1410_v30 = vpack.c.bf16 %v361_v27, %v360_v25  ;;  %v365_v39 = vld [vmem:[#allocation5 + $0x78] sm:$0xff] }
  0x9d   : > { %1399 = vmatpush3.bf16.msra.mxu0 %v1398_v7  ;;  %v362_v31 = vld [vmem:[#allocation5 + $0x60] sm:$0xff]  ;;  %v1428_v32 = vpack.c.bf16 %v480_v29, %v479_v28  ;;  %v482_v35 = vld [vmem:[#allocation7 + $0x90] sm:$0xff]  ;;  %v596_v44 = vld [vmem:[#allocation7 + $0x8] sm:$0xff] }
  0x9e   : > { %1400 = vmatprep.subr.bf16.mxu0 %v1818_v0  ;;  %v481_v34 = vld [vmem:[#allocation7 + $0x80] sm:$0xff]  ;;  %v1413_v36 = vpack.c.bf16 %v363_v33, %v362_v31  ;;  %v364_v37 = vld [vmem:[#allocation5 + $0x70] sm:$0xff]  ;;  %v597_v45 = vld [vmem:[#allocation7 + $0x18] sm:$0xff] }
  0x9f   : > { %1423 = vmatpush3.bf16.msra.mxu1 %v1422_v20  ;;  %v1431_v38 = vpack.c.bf16 %v482_v35, %v481_v34  ;;  %v483_v40 = vld [vmem:[#allocation7 + $0xa0] sm:$0xff]  ;;  %v484_v41 = vld [vmem:[#allocation7 + $0xb0] sm:$0xff]  ;;  %v1416_v42 = vpack.c.bf16 %v365_v39, %v364_v37  ;;  %v1443_v49 = vpack.c.bf16 %v597_v45, %v596_v44  ;;  %v598_v50 = vld [vmem:[#allocation7 + $0x28] sm:$0xff] }
  0xa0   : > { %1424 = vmatprep.subr.bf16.mxu1 %v1818_v0  ;;  %v1434_v43 = vpack.c.bf16 %v484_v41, %v483_v40  ;;  %v485_v46 = vld [vmem:[#allocation7 + $0xc0] sm:$0xff]  ;;  %v486_v47 = vld [vmem:[#allocation7 + $0xd0] sm:$0xff]  ;;  %v599_v51 = vld [vmem:[#allocation7 + $0x38] sm:$0xff] }
  0xa1   : > { %1402 = vmatpush3.bf16.msra.mxu0 %v1401_v10  ;;  %v343_v48 = vld [vmem:[%s2061_s22] sm:$0xff]  ;;  %v1437_v52 = vpack.c.bf16 %v486_v47, %v485_v46  ;;  %v344_v53 = vld [vmem:[%s2061_s22 + $0x8] sm:$0xff]  ;;  %v1446_v54 = vpack.c.bf16 %v599_v51, %v598_v50  ;;  %v345_v57 = vld [vmem:[%s2061_s22 + $0x10] sm:$0xff] }
  0xa2   : > { %1403 = vmatprep.subr.bf16.mxu0 %v1818_v0  ;;  %v600_v55 = vld [vmem:[#allocation7 + $0x48] sm:$0xff]  ;;  %v601_v56 = vld [vmem:[#allocation7 + $0x58] sm:$0xff]  ;;  %v487_v13 = vld [vmem:[#allocation7 + $0xe0] sm:$0xff] }
  0xa3   : > { %1426 = vmatpush3.bf16.msra.mxu1 %v1425_v26  ;;  %v1449_v58 = vpack.c.bf16 %v601_v56, %v600_v55  ;;  %v602_v59 = vld [vmem:[#allocation7 + $0x68] sm:$0xff]  ;;  %v603_v60 = vld [vmem:[#allocation7 + $0x78] sm:$0xff]  ;;  %v488_v14 = vld [vmem:[#allocation7 + $0xf0] sm:$0xff] }
  0xa4   : > { %1427 = vmatprep.subr.bf16.mxu1 %v1818_v0  ;;  %v346_v61 = vld [vmem:[%s2061_s22 + $0x18] sm:$0xff]  ;;  %v1452_v62 = vpack.c.bf16 %v603_v60, %v602_v59  ;;  %v605_v2 = vld [vmem:[#allocation7 + $0x98] sm:$0xff]  ;;  %v347_v3 = vld [vmem:[%s2061_s22 + $0x20] sm:$0xff]  ;;  %v1440_v16 = vpack.c.bf16 %v488_v14, %v487_v13 }
  0xa5   : > { %1405 = vmatpush3.bf16.msra.mxu0 %v1404_v18  ;;  %v604_v63 = vld [vmem:[#allocation7 + $0x88] sm:$0xff]  ;;  %v607_v6 = vld [vmem:[#allocation7 + $0xb8] sm:$0xff]  ;;  %v1074_v19 = vld [vmem:[%s2270_s2] ss:$0 sm:$0xff] }
  0xa6   : > { %1406 = vmatprep.subr.bf16.mxu0 %v1818_v0  ;;  %v1455_v4 = vpack.c.bf16 %v605_v2, %v604_v63  ;;  %v606_v5 = vld [vmem:[#allocation7 + $0xa8] sm:$0xff]  ;;  %v348_v7 = vld [vmem:[%s2061_s22 + $0x28] sm:$0xff]  ;;  %v349_v11 = vld [vmem:[%s2061_s22 + $0x30] sm:$0xff]  ;;  %s1734_s22 = scalar_lea.vmem %s2220_s16, 896 }
  0xa7   : > { %1429 = vmatpush3.bf16.msra.mxu1 %v1428_v32  ;;  %v1458_v8 = vpack.c.bf16 %v607_v6, %v606_v5  ;;  %v608_v9 = vld [vmem:[#allocation7 + $0xc8] sm:$0xff]  ;;  %v609_v10 = vld [vmem:[#allocation7 + $0xd8] sm:$0xff]  ;;  %v817_v41 = vld [vmem:[#allocation8] sm:$0xff]  ;;  %p1735_p6 = scmp.ne.s32.totalorder %s2220_s16, %s1734_s22  ;;  %p1742_p7 = scmp.lt.s32.totalorder %s1740_s9, %s1734_s22 }
  0xa8   : > { %1430 = vmatprep.subr.bf16.mxu1 %v1818_v0  ;;  %v1461_v12 = vpack.c.bf16 %v609_v10, %v608_v9  ;;  %v610_v15 = vld [vmem:[#allocation7 + $0xe8] sm:$0xff]  ;;  %v611_v17 = vld [vmem:[#allocation7 + $0xf8] sm:$0xff]  ;;  %v821_v47 = vld [vmem:[#allocation8 + $0x20] sm:$0xff] }
  0xa9   : > { %1408 = vmatpush3.bf16.msra.mxu0 %v1407_v24  ;;  %v1464_v18 = vpack.c.bf16 %v611_v17, %v610_v15  ;;  %v820_v45 = vld [vmem:[#allocation8 + $0x18] sm:$0xff]  ;;  %v823_v50 = vld [vmem:[#allocation8 + $0x30] sm:$0xff]  ;;  %p1736_p8 = pnand %p1735_p6, %p2004_p11  ;;  %p1743_p9 = por %p1742_p7, %p1741_p3 }
  0xaa   : > { %1409 = vmatprep.subr.bf16.mxu0 %v1818_v0  ;;  %v824_v51 = vld [vmem:[#allocation8 + $0x38] sm:$0xff] }
  0xab   : > { %1432 = vmatpush3.bf16.msra.mxu1 %v1431_v38  ;;  %p1737_p10 = pneg %p1736_p8 }
  0xac   : > { %1433 = vmatprep.subr.bf16.mxu1 %v1818_v0 }
  0xad   : > { %1411 = vmatpush3.bf16.msra.mxu0 %v1410_v30  ;;  %p1744_p12 = pnand %p1743_p9, %p1737_p10 }
  0xae   : > { %1412 = vmatprep.subr.bf16.mxu0 %v1818_v0 }
  0xaf   : > { %1435 = vmatpush3.bf16.msra.mxu1 %v1434_v43  ;;  %v819_v43 = vld [vmem:[#allocation8 + $0x10] sm:$0xff] }
  0xb0   : > { %1436 = vmatprep.subr.bf16.mxu1 %v1818_v0  ;;  %v1470_v46 = vpack.c.bf16 %v820_v45, %v819_v43 }
  0xb1   : > { %1414 = vmatpush3.bf16.msra.mxu0 %v1413_v36 }
  0xb2   : > { %1415 = vmatprep.subr.bf16.mxu0 %v1818_v0 }
  0xb3   : > { %1438 = vmatpush3.bf16.msra.mxu1 %v1437_v52  ;;  %v1476_v52 = vpack.c.bf16 %v824_v51, %v823_v50 }
  0xb4   : > { %1439 = vmatprep.subr.bf16.mxu1 %v1818_v0 }
  0xb5   : > { %1417 = vmatpush3.bf16.msra.mxu0 %v1416_v42  ;;  %v818_v42 = vld [vmem:[#allocation8 + $0x8] sm:$0xff] }
  0xb6   : > { %1442 = vmatprep.subr.bf16.mxu0 %v1818_v0  ;;  %v1467_v44 = vpack.c.bf16 %v818_v42, %v817_v41 }
  0xb7   : > { %1441 = vmatpush3.bf16.msra.mxu1 %v1440_v16 }
  0xb8   : > { %1215 = vmatmul.mubr.f32.vlgmr.msra.gmra.mrb[0].mxu0 %v343_v48  ;;  %1466 = vmatprep.subr.bf16.mxu1 %v1818_v0  ;;  %v822_v48 = vld [vmem:[#allocation8 + $0x28] sm:$0xff] }
  0xb9   : > { %1217 = vmatprep.mubr.msk.f32.mxu0 %vm1819_vm0, %v1820_v1  ;;  %1444 = vmatpush3.bf16.msra.mxu0 %v1443_v49  ;;  %v1473_v49 = vpack.c.bf16 %v822_v48, %v821_v47 }
  0xba   : > { %1445 = vmatprep.subr.bf16.mxu0 %v1818_v0 }
  0xbc   : > { %1218 = vmatmul.mubr.f32.gmra.mrb[2].mxu0 %v344_v53  ;;  %v1076_v53 = vld [vmem:[%s2272_s4 + $0x1] ss:$0 sm:$0xff] }
  0xbd   : > { %1220 = vmatprep.mubr.msk.f32.mxu0 %vm1819_vm0, %v1820_v1  ;;  %1447 = vmatpush3.bf16.msra.mxu0 %v1446_v54 }
  0xbe   : > { %1448 = vmatprep.subr.bf16.mxu0 %v1818_v0 }
  0xc0   : > { %1221 = vmatmul.mubr.f32.gmra.mrb[4].mxu0 %v345_v57 }
  0xc1   : > { %1223 = vmatprep.mubr.msk.f32.mxu0 %vm1819_vm0, %v1820_v1  ;;  %1450 = vmatpush3.bf16.msra.mxu0 %v1449_v58 }
  0xc2   : > { %1451 = vmatprep.subr.bf16.mxu0 %v1818_v0 }
  0xc4   : > { %1224 = vmatmul.mubr.f32.gmra.mrb[6].mxu0 %v346_v61 }
  0xc5   : > { %1226 = vmatprep.mubr.msk.f32.mxu0 %vm1819_vm0, %v1820_v1  ;;  %1453 = vmatpush3.bf16.msra.mxu0 %v1452_v62 }
  0xc6   : > { %1454 = vmatprep.subr.bf16.mxu0 %v1818_v0 }
  0xc8   : > { %1227 = vmatmul.mubr.f32.gmra.mrb[8].mxu0 %v347_v3 }
  0xc9   : > { %1229 = vmatprep.mubr.msk.f32.mxu0 %vm1819_vm0, %v1820_v1  ;;  %1456 = vmatpush3.bf16.msra.mxu0 %v1455_v4 }
  0xca   : > { %1457 = vmatprep.subr.bf16.mxu0 %v1818_v0 }
  0xcc   : > { %1230 = vmatmul.mubr.f32.gmra.mrb[10].mxu0 %v348_v7 }
  0xcd   : > { %1232 = vmatprep.mubr.msk.f32.mxu0 %vm1819_vm0, %v1820_v1  ;;  %1459 = vmatpush3.bf16.msra.mxu0 %v1458_v8 }
  0xce   : > { %1460 = vmatprep.subr.bf16.mxu0 %v1818_v0 }
  0xd0   : > { %1233 = vmatmul.mubr.f32.gmra.mrb[12].mxu0 %v349_v11 }
  0xd1   : > { %1462 = vmatpush3.bf16.msra.mxu0 %v1461_v12  ;;  %1320 = vmatprep.mubr.msk.f32.mxu0 %vm1819_vm0, %v1820_v1 }
  0xd2   : > { %1463 = vmatprep.subr.bf16.mxu0 %v1818_v0 }
  0xd5   : > { %1465 = vmatpush3.bf16.msra.mxu0 %v1464_v18 }
 0x18b   : > { %v439_v20 = vpop.f32.mrb[0].mxu0 }
 0x18c   : > { %v440_v21 = vadd.f32 %v1074_v19, %v439_v20  ;;  %v1216_v22 = vpop.f32.mrb[1].mxu0 }
 0x18e   : > { %1268 = vmatmul.mubr.f32.vlgmr.msra.gmra.mrb[0].mxu1 %v440_v21  ;;  %1321 = vmatmul.mubr.f32.vlgmr.msra.gmra.mrb[14].mxu0 %v440_v21 }
 0x18f   : > { %v444_v23 = vpop.f32.mrb[2].mxu0  ;;  %1270 = vmatprep.mubr.msk.f32.mxu1 %vm1819_vm0, %v1820_v1  ;;  %1323 = vmatprep.mubr.msk.f32.mxu0 %vm1819_vm0, %v1820_v1 }
 0x190   : > { %v445_v24 = vadd.f32 %v1074_v19, %v444_v23  ;;  %v1219_v25 = vpop.f32.mrb[3].mxu0  ;;  %1468 = vmatpush3.bf16.msra.mxu1 %v1467_v44 }
 0x191   : > { %1469 = vmatprep.subr.bf16.mxu1 %v1818_v0 }
 0x192   : > { %1271 = vmatmul.mubr.f32.gmra.mrb[2].mxu1 %v445_v24  ;;  %1324 = vmatmul.mubr.f32.gmra.mrb[16].mxu0 %v445_v24 }
 0x193   : > { %v449_v26 = vpop.f32.mrb[4].mxu0  ;;  %1273 = vmatprep.mubr.msk.f32.mxu1 %vm1819_vm0, %v1820_v1  ;;  %1326 = vmatprep.mubr.msk.f32.mxu0 %vm1819_vm0, %v1820_v1 }
 0x194   : > { %v450_v27 = vadd.f32 %v1074_v19, %v449_v26  ;;  %v1222_v28 = vpop.f32.mrb[5].mxu0  ;;  %1471 = vmatpush3.bf16.msra.mxu1 %v1470_v46 }
 0x195   : > { %1472 = vmatprep.subr.bf16.mxu1 %v1818_v0 }
 0x196   : > { %1274 = vmatmul.mubr.f32.gmra.mrb[4].mxu1 %v450_v27  ;;  %1327 = vmatmul.mubr.f32.gmra.mrb[18].mxu0 %v450_v27 }
 0x197   : > { %v454_v29 = vpop.f32.mrb[6].mxu0  ;;  %1276 = vmatprep.mubr.msk.f32.mxu1 %vm1819_vm0, %v1820_v1  ;;  %1329 = vmatprep.mubr.msk.f32.mxu0 %vm1819_vm0, %v1820_v1 }
 0x198   : > { %v455_v30 = vadd.f32 %v1074_v19, %v454_v29  ;;  %v1225_v31 = vpop.f32.mrb[7].mxu0  ;;  %1474 = vmatpush3.bf16.msra.mxu1 %v1473_v49 }
 0x199   : > { %1475 = vmatprep.subr.bf16.mxu1 %v1818_v0 }
 0x19a   : > { %1277 = vmatmul.mubr.f32.gmra.mrb[6].mxu1 %v455_v30  ;;  %1330 = vmatmul.mubr.f32.gmra.mrb[20].mxu0 %v455_v30 }
 0x19b   : > { %v459_v32 = vpop.f32.mrb[8].mxu0  ;;  %1279 = vmatprep.mubr.msk.f32.mxu1 %vm1819_vm0, %v1820_v1  ;;  %1332 = vmatprep.mubr.msk.f32.mxu0 %vm1819_vm0, %v1820_v1 }
 0x19c   : > { %v460_v33 = vadd.f32 %v1074_v19, %v459_v32  ;;  %v1228_v34 = vpop.f32.mrb[9].mxu0  ;;  %1477 = vmatpush3.bf16.msra.mxu1 %v1476_v52 }
 0x19d   : > { %1478 = vmatprep.subr.bf16.mxu1 %v1818_v0 }
 0x19e   : > { %1280 = vmatmul.mubr.f32.gmra.mrb[8].mxu1 %v460_v33  ;;  %1333 = vmatmul.mubr.f32.gmra.mrb[22].mxu0 %v460_v33  ;;  %v1075_v33 = vld [vmem:[%s2272_s4] ss:$0 sm:$0xff] }
 0x19f   : > { %v464_v35 = vpop.f32.mrb[10].mxu0  ;;  %1282 = vmatprep.mubr.msk.f32.mxu1 %vm1819_vm0, %v1820_v1  ;;  %1335 = vmatprep.mubr.msk.f32.mxu0 %vm1819_vm0, %v1820_v1 }
 0x1a0   : > { %v465_v36 = vadd.f32 %v1074_v19, %v464_v35  ;;  %v1231_v37 = vpop.f32.mrb[11].mxu0 }
 0x1a2   : > { %1283 = vmatmul.mubr.f32.gmra.mrb[10].mxu1 %v465_v36  ;;  %1336 = vmatmul.mubr.f32.gmra.mrb[24].mxu0 %v465_v36 }
 0x1a3   : > { %v469_v38 = vpop.f32.mrb[12].mxu0  ;;  %1285 = vmatprep.mubr.msk.f32.mxu1 %vm1819_vm0, %v1820_v1  ;;  %1338 = vmatprep.mubr.msk.f32.mxu0 %vm1819_vm0, %v1820_v1 }
 0x1a4   : > { %v470_v39 = vadd.f32 %v1074_v19, %v469_v38  ;;  %v1234_v40 = vpop.f32.mrb[13].mxu0 }
 0x1a6   : > { %1286 = vmatmul.mubr.f32.gmra.mrb[12].mxu1 %v470_v39  ;;  %1339 = vmatmul.mubr.f32.gmra.mrb[26].mxu0 %v470_v39 }
 0x1a7   : > { %1373 = vmatprep.mubr.msk.f32.mxu1 %vm1819_vm0, %v1820_v1 }
 0x261   : > { %v562_v54 = vpop.f32.mrb[0].mxu1  ;;  %v685_v55 = vpop.f32.mrb[14].mxu0 }
 0x262   : > { %v686_v56 = vadd.f32 %v1076_v53, %v685_v55  ;;  %v1269_v57 = vpop.f32.mrb[1].mxu1  ;;  %v1322_v58 = vpop.f32.mrb[15].mxu0  ;;  %v563_v41 = vadd.f32 %v1075_v33, %v562_v54 }
 0x264   : > { %v1077_v59 = vmul.f32 -1.442695, %v686_v56 }
 0x265   : > { %v567_v60 = vpop.f32.mrb[2].mxu1  ;;  %v690_v61 = vpop.f32.mrb[16].mxu0 }
 0x266   : > { %1578 = vpow2.f32 %v1077_v59  ;;  %v691_v62 = vadd.f32 %v1076_v53, %v690_v61  ;;  %v1272_v63 = vpop.f32.mrb[3].mxu1  ;;  %v1325_v2 = vpop.f32.mrb[17].mxu0  ;;  %v568_v47 = vadd.f32 %v1075_v33, %v567_v60 }
 0x268   : > { %v1078_v3 = vmul.f32 -1.442695, %v691_v62 }
 0x269   : > { %v572_v4 = vpop.f32.mrb[4].mxu1  ;;  %v695_v5 = vpop.f32.mrb[18].mxu0 }
 0x26a   : > { %1580 = vpow2.f32 %v1078_v3  ;;  %v696_v6 = vadd.f32 %v1076_v53, %v695_v5  ;;  %v1275_v7 = vpop.f32.mrb[5].mxu1  ;;  %v1328_v8 = vpop.f32.mrb[19].mxu0 }
 0x26b   : > { %v826_v7 = vld [vmem:[#allocation8 + $0x48] sm:$0xff] }
 0x26c   : > { %v1079_v9 = vmul.f32 -1.442695, %v696_v6  ;;  %v825_v6 = vld [vmem:[#allocation8 + $0x40] sm:$0xff] }
 0x26d   : > { %v577_v10 = vpop.f32.mrb[6].mxu1  ;;  %v700_v11 = vpop.f32.mrb[20].mxu0 }
 0x26e   : > { %1582 = vpow2.f32 %v1079_v9  ;;  %v701_v12 = vadd.f32 %v1076_v53, %v700_v11  ;;  %v1278_v13 = vpop.f32.mrb[7].mxu1  ;;  %v1331_v14 = vpop.f32.mrb[21].mxu0  ;;  %v578_v59 = vadd.f32 %v1075_v33, %v577_v10  ;;  %v1479_v10 = vpack.c.bf16 %v826_v7, %v825_v6 }
 0x26f   : > { %v827_v13 = vld [vmem:[#allocation8 + $0x50] sm:$0xff]  ;;  %v828_v14 = vld [vmem:[#allocation8 + $0x58] sm:$0xff] }
 0x270   : > { %v1579_v15 = vpop.eup %1578  ;;  %v1080_v16 = vmul.f32 -1.442695, %v701_v12  ;;  %1480 = vmatpush3.bf16.msra.mxu1 %v1479_v10 }
 0x271   : > { %v740_v17 = vadd.f32 1.0, %v1579_v15  ;;  %v582_v18 = vpop.f32.mrb[8].mxu1  ;;  %v705_v19 = vpop.f32.mrb[22].mxu0  ;;  %1481 = vmatprep.subr.bf16.mxu1 %v1818_v0 }
 0x272   : > { %1584 = vpow2.f32 %v1080_v16  ;;  %v706_v20 = vadd.f32 %v1076_v53, %v705_v19  ;;  %v1281_v21 = vpop.f32.mrb[9].mxu1  ;;  %v1334_v22 = vpop.f32.mrb[23].mxu0  ;;  %v583_v2 = vadd.f32 %v1075_v33, %v582_v18 }
 0x273   : > { %1586 = vrcp.f32 %v740_v17  ;;  %v1482_v17 = vpack.c.bf16 %v828_v14, %v827_v13  ;;  %v830_v21 = vld [vmem:[#allocation8 + $0x68] sm:$0xff] }
 0x274   : > { %v1581_v23 = vpop.eup %1580  ;;  %v1081_v24 = vmul.f32 -1.442695, %v706_v20  ;;  %v829_v20 = vld [vmem:[#allocation8 + $0x60] sm:$0xff] }
 0x275   : > { %v741_v25 = vadd.f32 1.0, %v1581_v23  ;;  %v587_v26 = vpop.f32.mrb[10].mxu1  ;;  %v710_v27 = vpop.f32.mrb[24].mxu0  ;;  %1483 = vmatpush3.bf16.msra.mxu1 %v1482_v17  ;;  %v1485_v23 = vpack.c.bf16 %v830_v21, %v829_v20 }
 0x276   : > { %1588 = vpow2.f32 %v1081_v24  ;;  %v711_v28 = vadd.f32 %v1076_v53, %v710_v27  ;;  %v1284_v29 = vpop.f32.mrb[11].mxu1  ;;  %v1337_v30 = vpop.f32.mrb[25].mxu0  ;;  %v588_v8 = vadd.f32 %v1075_v33, %v587_v26  ;;  %1484 = vmatprep.subr.bf16.mxu1 %v1818_v0  ;;  %v831_v24 = vld [vmem:[#allocation8 + $0x70] sm:$0xff] }
 0x277   : > { %1590 = vrcp.f32 %v741_v25  ;;  %v832_v25 = vld [vmem:[#allocation8 + $0x78] sm:$0xff] }
 0x278   : > { %v1583_v31 = vpop.eup %1582  ;;  %v1082_v32 = vmul.f32 -1.442695, %v711_v28  ;;  %v1488_v26 = vpack.c.bf16 %v832_v25, %v831_v24 }
 0x279   : > { %v742_v34 = vadd.f32 1.0, %v1583_v31  ;;  %v592_v35 = vpop.f32.mrb[12].mxu1  ;;  %v715_v36 = vpop.f32.mrb[26].mxu0  ;;  %1486 = vmatpush3.bf16.msra.mxu1 %v1485_v23 }
 0x27a   : > { %1592 = vpow2.f32 %v1082_v32  ;;  %v716_v37 = vadd.f32 %v1076_v53, %v715_v36  ;;  %v1287_v38 = vpop.f32.mrb[13].mxu1  ;;  %v1340_v39 = vpop.f32.mrb[27].mxu0  ;;  %v573_v53 = vadd.f32 %v1075_v33, %v572_v4  ;;  %v593_v15 = vadd.f32 %v1075_v33, %v592_v35  ;;  %1487 = vmatprep.subr.bf16.mxu1 %v1818_v0 }
 0x27b   : > { %1594 = vrcp.f32 %v742_v34 }
 0x27c   : > { %v1585_v40 = vpop.eup %1584  ;;  %v1083_v42 = vmul.f32 -1.442695, %v716_v37 }
 0x27d   : > { %v1587_v43 = vpop.eup %1586  ;;  %v743_v44 = vadd.f32 1.0, %v1585_v40  ;;  %1489 = vmatpush3.bf16.msra.mxu1 %v1488_v26 }
 0x27e   : > { %1596 = vpow2.f32 %v1083_v42  ;;  %v2164_v45 = vmul.f32 %v1587_v43, %v563_v41 }
 0x27f   : > { %1598 = vrcp.f32 %v743_v44 }
 0x280   : > { %v1589_v46 = vpop.eup %1588  ;;  %v768_v48 = vmul.f32 %v2164_v45, %v2164_v45 }
 0x281   : > { %v1591_v49 = vpop.eup %1590  ;;  %v744_v50 = vadd.f32 1.0, %v1589_v46 }
 0x282   : > { %775 = vadd.xlane.f32.xlu0 %v768_v48  ;;  %v2168_v51 = vmul.f32 %v1591_v49, %v568_v47 }
 0x283   : > { %1600 = vrcp.f32 %v744_v50 }
 0x284   : > { %v1593_v52 = vpop.eup %1592  ;;  %v769_v54 = vmul.f32 %v2168_v51, %v2168_v51 }
 0x285   : > { %v1595_v55 = vpop.eup %1594  ;;  %v745_v56 = vadd.f32 1.0, %v1593_v52 }
 0x286   : > { %777 = vadd.xlane.f32.xlu0 %v769_v54  ;;  %v2172_v57 = vmul.f32 %v1595_v55, %v573_v53 }
 0x287   : > { %1602 = vrcp.f32 %v745_v56 }
 0x288   : > { %v1597_v58 = vpop.eup %1596  ;;  %v770_v60 = vmul.f32 %v2172_v57, %v2172_v57 }
 0x289   : > { %v1599_v61 = vpop.eup %1598  ;;  %v746_v62 = vadd.f32 1.0, %v1597_v58 }
 0x28a   : > { %779 = vadd.xlane.f32.xlu1 %v770_v60  ;;  %v2176_v63 = vmul.f32 %v1599_v61, %v578_v59  ;;  %v1084_v61 = vld [vmem:[%s2274_s6] ss:$0 sm:$0xff] }
 0x28b   : > { %1604 = vrcp.f32 %v746_v62 }
 0x28c   : > { %v771_v3 = vmul.f32 %v2176_v63, %v2176_v63 }
 0x28d   : > { %v1601_v4 = vpop.eup %1600 }
 0x28e   : > { %781 = vadd.xlane.f32.xlu1 %v771_v3  ;;  %v2180_v5 = vmul.f32 %v1601_v4, %v583_v2 }
 0x290   : > { %v772_v9 = vmul.f32 %v2180_v5, %v2180_v5 }
 0x291   : > { %v1603_v11 = vpop.eup %1602 }
 0x292   : > { %783 = vadd.xlane.f32.xlu0 %v772_v9  ;;  %v2184_v12 = vmul.f32 %v1603_v11, %v588_v8 }
 0x294   : > { %v773_v16 = vmul.f32 %v2184_v12, %v2184_v12 }
 0x295   : > { %v1605_v18 = vpop.eup %1604 }
 0x296   : > { %785 = vadd.xlane.f32.xlu1 %v773_v16  ;;  %v2189_v19 = vmul.f32 %v1605_v18, %v593_v15 }
 0x298   : > { %v774_v22 = vmul.f32 %v2189_v19, %v2189_v19 }
 0x29a   : > { %787 = vadd.xlane.f32.xlu0 %v774_v22 }
 0x30f   : > { %v776_v27 = vpop.xlane.xlu0 %775 }
 0x310   : > { %v789_v28 = vmul.f32 0.015625, %v776_v27 }
 0x312   : > { %v796_v29 = vadd.f32 1e-06, %v789_v28 }
 0x313   : > { %v778_v30 = vpop.xlane.xlu0 %777 }
 0x314   : > { %1606 = vrsqrt.f32 %v796_v29  ;;  %v790_v31 = vmul.f32 0.015625, %v778_v30 }
 0x316   : > { %v797_v32 = vadd.f32 1e-06, %v790_v31 }
 0x317   : > { %v780_v33 = vpop.xlane.xlu1 %779 }
 0x318   : > { %1608 = vrsqrt.f32 %v797_v32  ;;  %v791_v34 = vmul.f32 0.015625, %v780_v33 }
 0x31a   : > { %v798_v35 = vadd.f32 1e-06, %v791_v34 }
 0x31b   : > { %v782_v36 = vpop.xlane.xlu1 %781 }
 0x31c   : > { %1610 = vrsqrt.f32 %v798_v35  ;;  %v792_v37 = vmul.f32 0.015625, %v782_v36 }
 0x31e   : > { %v1607_v38 = vpop.eup %1606  ;;  %v799_v0 = vadd.f32 1e-06, %v792_v37 }
 0x31f   : > { %v784_v39 = vpop.xlane.xlu0 %783  ;;  %v810_v40 = vmul.f32 %v1607_v38, %v2164_v45 }
 0x320   : > { %1612 = vrsqrt.f32 %v799_v0  ;;  %v793_v41 = vmul.f32 0.015625, %v784_v39 }
 0x321   : > { %1374 = vmatmul.mubr.f32.vlgmr.msra.gmra.mrb[14].mxu1 %v810_v40 }
 0x322   : > { %v1609_v42 = vpop.eup %1608  ;;  %v800_v43 = vadd.f32 1e-06, %v793_v41  ;;  %1376 = vmatprep.mubr.msk.f32.mxu1 %vm1819_vm0, %v1820_v1 }
 0x323   : > { %v786_v44 = vpop.xlane.xlu1 %785  ;;  %v811_v46 = vmul.f32 %v1609_v42, %v2168_v51 }
 0x324   : > { %1614 = vrsqrt.f32 %v800_v43  ;;  %v794_v47 = vmul.f32 0.015625, %v786_v44 }
 0x325   : > { %1377 = vmatmul.mubr.f32.gmra.mrb[16].mxu1 %v811_v46 }
 0x326   : > { %v1611_v48 = vpop.eup %1610  ;;  %v801_v49 = vadd.f32 1e-06, %v794_v47  ;;  %1379 = vmatprep.mubr.msk.f32.mxu1 %vm1819_vm0, %v1820_v1 }
 0x327   : > { %v788_v45 = vpop.xlane.xlu0 %787  ;;  %v812_v50 = vmul.f32 %v1611_v48, %v2172_v57 }
 0x328   : > { %1616 = vrsqrt.f32 %v801_v49  ;;  %v795_v52 = vmul.f32 0.015625, %v788_v45 }
 0x329   : > { %1380 = vmatmul.mubr.f32.gmra.mrb[18].mxu1 %v812_v50 }
 0x32a   : > { %v1613_v53 = vpop.eup %1612  ;;  %v802_v54 = vadd.f32 1e-06, %v795_v52  ;;  %1382 = vmatprep.mubr.msk.f32.mxu1 %vm1819_vm0, %v1820_v1 }
 0x32b   : > { %v813_v51 = vmul.f32 %v1613_v53, %v2176_v63 }
 0x32c   : > { %1618 = vrsqrt.f32 %v802_v54 }
 0x32d   : > { %1383 = vmatmul.mubr.f32.gmra.mrb[20].mxu1 %v813_v51 }
 0x32e   : > { %v1615_v55 = vpop.eup %1614  ;;  %1385 = vmatprep.mubr.msk.f32.mxu1 %vm1819_vm0, %v1820_v1 }
 0x32f   : > { %v814_v56 = vmul.f32 %v1615_v55, %v2180_v5 }
 0x331   : > { %1386 = vmatmul.mubr.f32.gmra.mrb[22].mxu1 %v814_v56 }
 0x332   : > { %v1617_v57 = vpop.eup %1616  ;;  %1388 = vmatprep.mubr.msk.f32.mxu1 %vm1819_vm0, %v1820_v1 }
 0x333   : > { %v815_v58 = vmul.f32 %v1617_v57, %v2184_v12 }
 0x335   : > { %1389 = vmatmul.mubr.f32.gmra.mrb[24].mxu1 %v815_v58 }
 0x336   : > { %v1619_v59 = vpop.eup %1618  ;;  %1391 = vmatprep.mubr.msk.f32.mxu1 %vm1819_vm0, %v1820_v1 }
 0x337   : > { %v816_v60 = vmul.f32 %v1619_v59, %v2189_v19 }
 0x339   : > { %1392 = vmatmul.mubr.f32.gmra.mrb[26].mxu1 %v816_v60 }
 0x3f4   : > { %v906_v62 = vpop.f32.mrb[14].mxu1 }
 0x3f5   : > { %v907_v63 = vadd.f32 %v1084_v61, %v906_v62  ;;  %v1375_v2 = vpop.f32.mrb[15].mxu1 }
 0x3f7   : > { %940 = vst [vmem:[%s340_s23] sm:$0xff] %v907_v63 }
 0x3f8   : > { %v911_v3 = vpop.f32.mrb[16].mxu1 }
 0x3f9   : > { %v912_v4 = vadd.f32 %v1084_v61, %v911_v3  ;;  %v1378_v5 = vpop.f32.mrb[17].mxu1 }
 0x3fb   : > { %941 = vst [vmem:[%s340_s23 + $0x8] sm:$0xff] %v912_v4 }
 0x3fc   : > { %v916_v6 = vpop.f32.mrb[18].mxu1 }
 0x3fd   : > { %v917_v1 = vadd.f32 %v1084_v61, %v916_v6  ;;  %v1381_v7 = vpop.f32.mrb[19].mxu1 }
 0x3ff   : > { %942 = vst [vmem:[%s340_s23 + $0x10] sm:$0xff] %v917_v1 }
 0x400   : > { %v921_v8 = vpop.f32.mrb[20].mxu1 }
 0x401   : > { %v922_v9 = vadd.f32 %v1084_v61, %v921_v8  ;;  %v1384_v10 = vpop.f32.mrb[21].mxu1 }
 0x403   : > { %943 = vst [vmem:[%s340_s23 + $0x18] sm:$0xff] %v922_v9 }
 0x404   : > { %v926_v11 = vpop.f32.mrb[22].mxu1 }
 0x405   : > { %v927_v12 = vadd.f32 %v1084_v61, %v926_v11  ;;  %v1387_v13 = vpop.f32.mrb[23].mxu1 }
 0x407   : > { %944 = vst [vmem:[%s340_s23 + $0x20] sm:$0xff] %v927_v12 }
 0x408   : > { %v931_v14 = vpop.f32.mrb[24].mxu1 }
 0x409   : > { %v932_v15 = vadd.f32 %v1084_v61, %v931_v14  ;;  %v1390_v16 = vpop.f32.mrb[25].mxu1 }
 0x40b   : > { %945 = vst [vmem:[%s340_s23 + $0x28] sm:$0xff] %v932_v15 }
 0x40c   : > { %v936_v17 = vpop.f32.mrb[26].mxu1 }
 0x40d   : > { %v937_v18 = vadd.f32 %v1084_v61, %v936_v17  ;;  %v1393_v19 = vpop.f32.mrb[27].mxu1 }
 0x40f   : > { %946 = vst [vmem:[%s340_s23 + $0x30] sm:$0xff] %v937_v18 }
 0x410   : > { %1747 = shalt.err (!%p1744_p12)
}
 0x411   : > { %s1748_s29 = scalar_lea.hbm %s2225_s12, 896  ;;  %s1752_s1 = scalar_lea.hbm %s2275_s7, 3584 }
 0x412   : > { %p1749_p0 = scmp.ne.s32.totalorder %s2225_s12, %s1748_s29  ;;  %p1753_p1 = scmp.lt.u32.totalorder %s2225_s12, %s2275_s7 }
 0x413   : > { %p1754_p2 = scmp.lt.u32.totalorder %s1752_s1, %s1748_s29  ;;  %p1756_p6 = scmp.lt.u32.totalorder %s1748_s29, %s2225_s12 }
 0x414   : > { %p1750_p5 = pnand %p1749_p0, %p2004_p11 }
 0x415   : > { %p1755_p4 = por %p1754_p2, %p1753_p1 }
 0x416   : > { %p1751_p13 = pneg %p1750_p5 }
 0x417   : > { %p1757_p8 = por %p1756_p6, %p1755_p4 }
 0x419   : > { %p1758_p10 = pnand %p1757_p8, %p1751_p13 }
 0x41b   : > { %1761 = shalt.err (!%p1758_p10)
}
 0x41c   : > { %s1822_s23 = smov 128   ;;  %s1823_s18 = smov 8  }
 0x41d   : > { %1506 = dma.vmem_to_hbm [thread:$0]  (%p2004_p11), %s2220_s16, 896, %s2225_s12, %s948_s17, %s1822_s23, %s1822_s23, %s1823_s18  }
 0x41e PF: > { %s2305_s14 = sld [smem:[#allocation15_spill]]  ;;  %p1533_p3 = scmp.ge.s32.totalorder %s1808_s27, 2 }
 0x41f   : > { %s976_s3 = sand.u32 1, %s1796_s24  }
 0x420   : > { %s977_s22 = scalar_lea.sflag [#allocation4], %s976_s3 }
 0x424   : > { %p2306_p7 = scmp.ne.s32.totalorder %s2305_s14, 0 }
 0x426   : > { %p1523_p9 = pnand %p1533_p3, %p2306_p7 }
 0x428   : > { %1791 = dma.done.wait (!%p1523_p9), %s977_s22, 896  }
 0x429   : > { %1793 = vsyncadd (!%p1523_p9), %s977_s22, 4294966400  ;;  %p22_p12 = scmp.ge.s32.totalorder %s1969_s21, 6   ;;  %s2307_s24 = smov %s1800_s25 }
 0x42a   : > { %s2308_s25 = smov %s1804_s26  ;;  %s2309_s26 = smov %s2000_s13 }
 0x42b   : > { %s2310_s27 = smov %s1969_s21  ;;  %24 = sbr.rel (!%p22_p12) target bundleno = 10 (0xa), region = 105 }
 0x432   :  { %982 = vsyncpa [#allocation3], 1 }
 0x433   :  { %984 = vsyncpa [#allocation3 + $0x1], 1 }
 0x434   :  { %985 = vsyncpa [#allocation6], 1 }
 0x435   :  { %986 = vsyncpa [#allocation9], 1 }
 0x436   :  { %987 = vsyncpa [#allocation4], 1 }
 0x437   :  { %989 = vsyncpa [#allocation4 + $0x1], 1 }

// kernel: tpu_custom_call.1
= control target key start
LH: loop header
LB: loop body
LE: loop exit
PB: predicated region body
PF: predicated region fallthrough
CT: control target
= control target key end

     0   :  { %s2268_s0 = inlined_call_operand.hbm [shape: f32[224,128], index: 0, kind: input, shape index: {}]   ;;  %s2269_s1 = inlined_call_operand.hbm [shape: f32[128,128], index: 1, kind: input, shape index: {}]   ;;  %s2270_s2 = inlined_call_operand.vmem [shape: f32[1,128], index: 2, kind: input, shape index: {}]   ;;  %s2271_s3 = inlined_call_operand.hbm [shape: f32[128,256], index: 3, kind: input, shape index: {}]   ;;  %s2272_s4 = inlined_call_operand.vmem [shape: f32[1,256], index: 4, kind: input, shape index: {}]   ;;  %s2273_s5 = inlined_call_operand.hbm [shape: f32[128,128], index: 5, kind: input, shape index: {}]   ;;  %s2274_s6 = inlined_call_operand.vmem [shape: f32[1,128], index: 6, kind: input, shape index: {}]   ;;  %s2275_s7 = inlined_call_operand.hbm [shape: f32[224,128], index: 7, kind: output, shape index: {}]  }
   0x1   :  { %2284 = sst [smem:[#allocation16_spill]] %s2269_s1 }
   0x2   :  { %2285 = sst [smem:[#allocation17_spill]] %s2271_s3 }
   0x3   :  { %12 = vsyncpa [#allocation3], 0 }
   0x4   :  { %14 = vsyncpa [#allocation3 + $0x1], 0 }
   0x5   :  { %15 = vsyncpa [#allocation6], 0 }
   0x6   :  { %16 = vsyncpa [#allocation9], 0 }
   0x7   :  { %17 = vsyncpa [#allocation4], 0 }
   0x8   :  { %19 = vsyncpa [#allocation4 + $0x1], 0  ;;  %s1864_s24 = smov 0   ;;  %s1866_s25 = smov 0  }
   0x9   :  { %s1868_s26 = smov 0   ;;  %s1870_s27 = smov 0  }
   0xa LB: > { %s1885_s28 = sadd.s32 4294967295, %s1808_s27   ;;  %s1063_s29 = sadd.s32 4294967294, %s1808_s27   ;;  %s1808_s27 = sphi %s1870_s27, %s2310_s27   ;;  %s1804_s26 = sphi %s1868_s26, %s2309_s26   ;;  %s1800_s25 = sphi %s1866_s25, %s2308_s25   ;;  %s1796_s24 = sphi %s1864_s24, %s2307_s24  }
   0xb   : > { %p45_p0 = scmp.ne.s32.totalorder %s1800_s25, %s1796_s24  ;;  %p2276_p1 = scmp.eq.s32.totalorder %s1885_s28, 0 }
   0xc   : > { %p201_p3 = scmp.eq.s32.totalorder %s1063_s29, 3  ;;  %p1064_p5 = scmp.ge.s32.totalorder %s1808_s27, 1 }
   0xd   : > { %p1894_p4 = por %p2276_p1, %p45_p0  ;;  %p208_p7 = scmp.lt.s32.totalorder %s1808_s27, 5 }
   0xe   : > { %p1899_p6 = por %p201_p3, %p45_p0  ;;  %s1810_s10 = smov [#allocation5]  }
   0xf   : > { %s2286_s30 = scalar_select %p1894_p4, 1, 0 }
  0x10   : > { %s2287_s8 = scalar_select %p1899_p6, 1, 0 }
  0x11   : > { %p1904_p8 = pnand %p1064_p5, %p208_p7  ;;  %s220_s11 = sshll.u32 %s1810_s10, 4  ;;  %s221_s11 = int_to_ptr.vmem [resolvable:$true] %s220_s11 }
  0x12   : > { %2288 = sst [smem:[#allocation15_spill]] %s2287_s8  ;;  %s1811_s13 = smov [#allocation7]  }
  0x13   : > { %s2289_s9 = scalar_select %p1904_p8, 1, 0 }
  0x14   : > { %p1508_p9 = pneg %p1904_p8  ;;  %s236_s14 = sshll.u32 %s1811_s13, 4  ;;  %s1916_s14 = int_to_ptr.vmem [resolvable:$true] %s236_s14 }
  0x15   : > { %s2291_s1 = sld [smem:[#allocation16_spill]] }
  0x16   : > { %p1912_p10 = pnand %p1508_p9, %p2276_p1 }
  0x18   : > { %p1926_p12 = pneg %p1912_p10 }
  0x1b   : > { %s1620_s17 = scalar_lea.hbm %s2291_s1, 2048 }
  0x1c   : > { %p1621_p11 = scmp.ne.s32.totalorder %s2291_s1, %s1620_s17  ;;  %p1627_p3 = scmp.lt.u32.totalorder %s1620_s17, %s2291_s1 }
  0x1e   : > { %p1623_p13 = pnand %p1926_p12, %p1621_p11 }
  0x20   : > { %p1624_p0 = pneg %p1623_p13 }
  0x22   : > { %p1629_p5 = pnand %p1627_p3, %p1624_p0 }
  0x24   : > { %1632 = shalt.err (!%p1629_p5)
}
  0x25   : > { %s1633_s23 = scalar_lea.vmem %s221_s11, 2048  ;;  %p1641_p2 = scmp.lt.s32.totalorder %s221_s11, %s221_s11 }
  0x26   : > { %p1634_p7 = scmp.ne.s32.totalorder %s221_s11, %s1633_s23  ;;  %p1642_p6 = scmp.lt.s32.totalorder %s1633_s23, %s1633_s23 }
  0x28   : > { %p1636_p9 = pnand %p1634_p7, %p1926_p12  ;;  %p1643_p4 = por %p1642_p6, %p1641_p2 }
  0x2a   : > { %p1637_p1 = pneg %p1636_p9 }
  0x2c   : > { %p1644_p8 = pnand %p1643_p4, %p1637_p1 }
  0x2e   : > { %1647 = shalt.err (!%p1644_p8)
}
  0x2f   : > { %s2279_s29 = smov 128   ;;  %s2281_s10 = smov 8  }
  0x30   : > { %1511 = dma.hbm_to_vmem [thread:$0]  (!%p1912_p10), %s2291_s1, 2048, %s221_s11, [#allocation6], %s2279_s29, %s2279_s29, %s2281_s10  }
  0x31   : > { %s2293_s3 = sld [smem:[#allocation17_spill]] }
  0x37   : > { %s1648_s18 = scalar_lea.hbm %s2293_s3, 4096 }
  0x38   : > { %p1649_p1 = scmp.ne.s32.totalorder %s2293_s3, %s1648_s18  ;;  %p1655_p6 = scmp.lt.u32.totalorder %s1648_s18, %s2293_s3 }
  0x3a   : > { %p1651_p2 = pnand %p1649_p1, %p1926_p12 }
  0x3c   : > { %p1652_p4 = pneg %p1651_p2 }
  0x3e   : > { %p1657_p8 = pnand %p1655_p6, %p1652_p4 }
  0x40   : > { %1660 = shalt.err (!%p1657_p8)
}
  0x41   : > { %s1661_s11 = scalar_lea.vmem %s1916_s14, 4096  ;;  %p1669_p3 = scmp.lt.s32.totalorder %s1916_s14, %s1916_s14 }
  0x42   : > { %p1662_p11 = scmp.ne.s32.totalorder %s1916_s14, %s1661_s11  ;;  %p1670_p5 = scmp.lt.s32.totalorder %s1661_s11, %s1661_s11 }
  0x44   : > { %p1664_p13 = pnand %p1662_p11, %p1926_p12  ;;  %p1671_p7 = por %p1670_p5, %p1669_p3 }
  0x46   : > { %p1665_p0 = pneg %p1664_p13 }
  0x48   : > { %p1672_p9 = pnand %p1671_p7, %p1665_p0 }
  0x4a   : > { %1675 = shalt.err (!%p1672_p9)
}
  0x4b   : > { %s1814_s13 = smov 256   ;;  %s1815_s15 = smov 16  }
  0x4c   : > { %1514 = dma.hbm_to_vmem [thread:$0]  (!%p1912_p10), %s2293_s3, 4096, %s1916_s14, [#allocation6], %s1814_s13, %s1814_s13, %s1815_s15  }
  0x4d   : > { %s1816_s18 = smov [#allocation8]   ;;  %s1969_s21 = sadd.s32 1, %s1808_s27  }
  0x4e   : > { %s252_s19 = sshll.u32 %s1816_s18, 4  ;;  %s1676_s11 = scalar_lea.hbm %s2273_s5, 2048  ;;  %s253_s19 = int_to_ptr.vmem [resolvable:$true] %s252_s19 }
  0x4f   : > { %p1677_p1 = scmp.ne.s32.totalorder %s2273_s5, %s1676_s11  ;;  %p1683_p6 = scmp.lt.u32.totalorder %s1676_s11, %s2273_s5 }
  0x51   : > { %p1679_p2 = pnand %p1677_p1, %p1926_p12 }
  0x53   : > { %p1680_p4 = pneg %p1679_p2 }
  0x55   : > { %p1685_p8 = pnand %p1683_p6, %p1680_p4 }
  0x57   : > { %1688 = shalt.err (!%p1685_p8)
}
  0x58   : > { %s1689_s14 = scalar_lea.vmem %s253_s19, 2048  ;;  %p1697_p3 = scmp.lt.s32.totalorder %s253_s19, %s253_s19 }
  0x59   : > { %p1690_p11 = scmp.ne.s32.totalorder %s253_s19, %s1689_s14  ;;  %p1698_p5 = scmp.lt.s32.totalorder %s1689_s14, %s1689_s14 }
  0x5b   : > { %p1692_p13 = pnand %p1690_p11, %p1926_p12  ;;  %p1699_p7 = por %p1698_p5, %p1697_p3 }
  0x5d   : > { %p1693_p0 = pneg %p1692_p13 }
  0x5f   : > { %p1700_p9 = pnand %p1699_p7, %p1693_p0 }
  0x61   : > { %1703 = shalt.err (!%p1700_p9)
}
  0x62   : > { %s2294_s29 = smov 8   ;;  %s2295_s10 = smov 128  }
  0x63   : > { %1517 = dma.hbm_to_vmem [thread:$0]  (!%p1912_p10), %s2273_s5, 2048, %s253_s19, [#allocation9], %s2295_s10, %s2295_s10, %s2294_s29  }
  0x64   : > { %s29_s20 = ssub.s32 %s1808_s27, %s1969_s21  ;;  %s32_s12 = sadd.s32 1, %s1804_s26 }
  0x65   : > { %p30_p12 = scmp.eq.s32.totalorder %s29_s20, 0  ;;  %p39_p1 = scmp.ne.s32.totalorder %s1804_s26, %s1800_s25 }
  0x66   : > { %p40_p2 = scmp.eq.s32.totalorder %s1808_s27, 0  ;;  %p1529_p4 = scmp.lt.s32.totalorder %s1808_s27, 4 }
  0x67   : > { %s2000_s13 = scalar_select %p30_p12, %s1804_s26, %s32_s12  }
  0x68   : > { %p41_p6 = por %p40_p2, %p39_p1  ;;  %p2296_p8 = scmp.eq.s32.totalorder %s1885_s28, 3 }
  0x69   : > { %s269_s16 = sand.u32 1, %s1804_s26   ;;  %s1088_s17 = smul.u32 896, %s1808_s27 }
  0x6a   : > { %p2004_p11 = por %p2296_p8, %p39_p1  ;;  %s1490_s18 = smul.u32 56, %s269_s16 }
  0x6b   : > { %p2010_p13 = pnand %p1529_p4, %p41_p6  ;;  %s2017_s11 = scalar_lea.hbm %s2268_s0, %s1088_s17 }
  0x6c   : > { %s273_s14 = scalar_lea.vmem [#allocation2], %s1490_s18  ;;  %s2021_s8 = scalar_lea.sflag [#allocation3], %s269_s16 }
  0x6d   : > { %s280_s1 = sshll.u32 %s273_s14, 4  ;;  %s1704_s20 = scalar_lea.hbm %s2017_s11, 896  ;;  %s2019_s1 = int_to_ptr.vmem [resolvable:$true] %s280_s1 }
  0x6e   : > { %p1705_p10 = scmp.ne.s32.totalorder %s2017_s11, %s1704_s20  ;;  %p1706_p0 = pneg %p2010_p13 }
  0x6f   : > { %s1709_s19 = scalar_lea.hbm %s2268_s0, 3584  ;;  %p1710_p7 = scmp.lt.u32.totalorder %s2017_s11, %s2268_s0 }
  0x70   : > { %p1707_p3 = pnand %p1706_p0, %p1705_p10  ;;  %p1711_p9 = scmp.lt.u32.totalorder %s1709_s19, %s1704_s20 }
  0x71   : > { %p1713_p1 = scmp.lt.u32.totalorder %s1704_s20, %s2017_s11 }
  0x72   : > { %p1708_p5 = pneg %p1707_p3  ;;  %p1712_p12 = por %p1711_p9, %p1710_p7 }
  0x74   : > { %p1714_p2 = por %p1713_p1, %p1712_p12 }
  0x76   : > { %p1715_p4 = pnand %p1714_p2, %p1708_p5 }
  0x78   : > { %1718 = shalt.err (!%p1715_p4)
}
  0x79   : > { %s1719_s16 = scalar_lea.vmem %s2019_s1, 896  ;;  %s1817_s18 = smov [#allocation2]  }
  0x7a   : > { %p1720_p6 = scmp.ne.s32.totalorder %s2019_s1, %s1719_s16  ;;  %s1724_s14 = sshll.u32 %s1817_s18, 4  ;;  %s1725_s14 = int_to_ptr.vmem [resolvable:$false] %s1724_s14 }
  0x7b   : > { %s1726_s3 = scalar_lea.vmem %s1725_s14, 1792  ;;  %p1727_p3 = scmp.lt.s32.totalorder %s2019_s1, %s1725_s14 }
  0x7c   : > { %p1722_p8 = pnand %p1720_p6, %p1706_p0  ;;  %p1728_p7 = scmp.lt.s32.totalorder %s1726_s3, %s1719_s16 }
  0x7e   : > { %p1723_p10 = pneg %p1722_p8  ;;  %p1729_p9 = por %p1728_p7, %p1727_p3 }
  0x80   : > { %p1730_p12 = pnand %p1729_p9, %p1723_p10 }
  0x82   : > { %1733 = shalt.err (!%p1730_p12)
}
  0x83   : > { %1521 = dma.hbm_to_vmem [thread:$0]  (!%p2010_p13), %s2017_s11, 896, %s2019_s1, %s2021_s8, %s2295_s10, %s2295_s10, %s2294_s29  }
  0x84   : > { %p2299_p0 = scmp.ne.s32.totalorder %s2289_s9, 0 }
  0x85   : > { %s2055_s20 = sand.u32 (!%p2299_p0), 1, %s1800_s25   ;;  %p2300_p5 = scmp.ne.s32.totalorder (!%p2299_p0), %s2286_s30, 0 }
  0x86   : > { %292 = sbr.rel (%p2299_p0) target bundleno = 1054 (0x41e), region = 48  ;;  %s295_s17 = scalar_lea.sflag (!%p2299_p0), [#allocation3], %s2055_s20 }
  0x87   : > { %s1491_s12 = smul.u32 (!%p2299_p0), 56, %s2055_s20 }
  0x89   : > { %s2061_s22 = scalar_lea.vmem (!%p2299_p0), [#allocation2], %s1491_s12 }
  0x8d   : > { %1779 = dma.done.wait (%p2300_p5), %s295_s17, 896  }
  0x8e   : > { %1781 = vsyncadd (%p2300_p5), %s295_s17, 4294966400  ;;  %p2301_p13 = scmp.eq.s32.totalorder %s1885_s28, 0 }
  0x90   : > { %1783 = dma.done.wait (%p2301_p13), [#allocation6], 6144   ;;  %p2302_p1 = pmov %p2301_p13 }
  0x92   : > { %1785 = vsyncadd (%p2302_p1), [#allocation6], 4294961152  ;;  %p2303_p2 = pmov %p2302_p1 }
  0x93   : > { %p2304_p4 = pmov %p2302_p1 }
  0x94   : > { %1787 = dma.done.wait (%p2303_p2), [#allocation9], 2048  }
  0x95   : > { %1789 = vsyncadd (%p2304_p4), [#allocation9], 4294965248  ;;  %v1818_v0 = vmov 0.0|0.0   ;;  %vm1819_vm0 = vmmov 0   ;;  %v1820_v1 = vmov 0.0   ;;  %v350_v2 = vld [vmem:[#allocation5] sm:$0xff] }
  0x96   : > { %1394 = vmatprep.subr.bf16.mxu0 %v1818_v0  ;;  %1214 = vmatprep.mubr.msk.f32.mxu0 %vm1819_vm0, %v1820_v1  ;;  %v351_v3 = vld [vmem:[#allocation5 + $0x8] sm:$0xff]  ;;  %v352_v4 = vld [vmem:[#allocation5 + $0x10] sm:$0xff]  ;;  %v353_v6 = vld [vmem:[#allocation5 + $0x18] sm:$0xff]  ;;  %s340_s23 = scalar_lea.vmem [#allocation10], %s1491_s12  ;;  %s1089_s18 = smul.u32 896, %s1885_s28 }
  0x97   : > { %1418 = vmatprep.subr.bf16.mxu1 %v1818_v0  ;;  %1267 = vmatprep.mubr.msk.f32.mxu1 %vm1819_vm0, %v1820_v1  ;;  %v1395_v5 = vpack.c.bf16 %v351_v3, %v350_v2  ;;  %v1398_v7 = vpack.c.bf16 %v353_v6, %v352_v4  ;;  %v354_v8 = vld [vmem:[#allocation5 + $0x20] sm:$0xff]  ;;  %v355_v9 = vld [vmem:[#allocation5 + $0x28] sm:$0xff]  ;;  %v356_v12 = vld [vmem:[#allocation5 + $0x30] sm:$0xff]  ;;  %s961_s16 = sshll.u32 %s340_s23, 4  ;;  %s948_s17 = scalar_lea.sflag [#allocation4], %s2055_s20  ;;  %s2220_s16 = int_to_ptr.vmem [resolvable:$true] %s961_s16 }
  0x98   : > { %v1401_v10 = vpack.c.bf16 %v355_v9, %v354_v8  ;;  %v473_v11 = vld [vmem:[#allocation7] sm:$0xff]  ;;  %v357_v13 = vld [vmem:[#allocation5 + $0x38] sm:$0xff]  ;;  %v474_v14 = vld [vmem:[#allocation7 + $0x10] sm:$0xff]  ;;  %s2225_s12 = scalar_lea.hbm %s2275_s7, %s1089_s18  ;;  %s1821_s28 = smov [#allocation10]  }
  0x99   : > { %1396 = vmatpush3.bf16.msra.mxu0 %v1395_v5  ;;  %v1419_v15 = vpack.c.bf16 %v474_v14, %v473_v11  ;;  %v475_v16 = vld [vmem:[#allocation7 + $0x20] sm:$0xff]  ;;  %v476_v17 = vld [vmem:[#allocation7 + $0x30] sm:$0xff]  ;;  %v1404_v18 = vpack.c.bf16 %v357_v13, %v356_v12  ;;  %v359_v21 = vld [vmem:[#allocation5 + $0x48] sm:$0xff]  ;;  %s1738_s30 = sshll.u32 %s1821_s28, 4  ;;  %s1739_s30 = int_to_ptr.vmem [resolvable:$false] %s1738_s30 }
  0x9a   : > { %1397 = vmatprep.subr.bf16.mxu0 %v1818_v0  ;;  %v358_v19 = vld [vmem:[#allocation5 + $0x40] sm:$0xff]  ;;  %v1422_v20 = vpack.c.bf16 %v476_v17, %v475_v16  ;;  %v478_v23 = vld [vmem:[#allocation7 + $0x50] sm:$0xff]  ;;  %v361_v27 = vld [vmem:[#allocation5 + $0x58] sm:$0xff]  ;;  %s1740_s9 = scalar_lea.vmem %s1739_s30, 1792  ;;  %p1741_p3 = scmp.lt.s32.totalorder %s2220_s16, %s1739_s30 }
  0x9b   : > { %1420 = vmatpush3.bf16.msra.mxu1 %v1419_v15  ;;  %v477_v22 = vld [vmem:[#allocation7 + $0x40] sm:$0xff]  ;;  %v1407_v24 = vpack.c.bf16 %v359_v21, %v358_v19  ;;  %v360_v25 = vld [vmem:[#allocation5 + $0x50] sm:$0xff]  ;;  %v363_v33 = vld [vmem:[#allocation5 + $0x68] sm:$0xff] }
  0x9c   : > { %1421 = vmatprep.subr.bf16.mxu1 %v1818_v0  ;;  %v1425_v26 = vpack.c.bf16 %v478_v23, %v477_v22  ;;  %v479_v28 = vld [vmem:[#allocation7 + $0x60] sm:$0xff]  ;;  %v480_v29 = vld [vmem:[#allocation7 + $0x70] sm:$0xff]  ;;  %v1410_v30 = vpack.c.bf16 %v361_v27, %v360_v25  ;;  %v365_v39 = vld [vmem:[#allocation5 + $0x78] sm:$0xff] }
  0x9d   : > { %1399 = vmatpush3.bf16.msra.mxu0 %v1398_v7  ;;  %v362_v31 = vld [vmem:[#allocation5 + $0x60] sm:$0xff]  ;;  %v1428_v32 = vpack.c.bf16 %v480_v29, %v479_v28  ;;  %v482_v35 = vld [vmem:[#allocation7 + $0x90] sm:$0xff]  ;;  %v596_v44 = vld [vmem:[#allocation7 + $0x8] sm:$0xff] }
  0x9e   : > { %1400 = vmatprep.subr.bf16.mxu0 %v1818_v0  ;;  %v481_v34 = vld [vmem:[#allocation7 + $0x80] sm:$0xff]  ;;  %v1413_v36 = vpack.c.bf16 %v363_v33, %v362_v31  ;;  %v364_v37 = vld [vmem:[#allocation5 + $0x70] sm:$0xff]  ;;  %v597_v45 = vld [vmem:[#allocation7 + $0x18] sm:$0xff] }
  0x9f   : > { %1423 = vmatpush3.bf16.msra.mxu1 %v1422_v20  ;;  %v1431_v38 = vpack.c.bf16 %v482_v35, %v481_v34  ;;  %v483_v40 = vld [vmem:[#allocation7 + $0xa0] sm:$0xff]  ;;  %v484_v41 = vld [vmem:[#allocation7 + $0xb0] sm:$0xff]  ;;  %v1416_v42 = vpack.c.bf16 %v365_v39, %v364_v37  ;;  %v1443_v49 = vpack.c.bf16 %v597_v45, %v596_v44  ;;  %v598_v50 = vld [vmem:[#allocation7 + $0x28] sm:$0xff] }
  0xa0   : > { %1424 = vmatprep.subr.bf16.mxu1 %v1818_v0  ;;  %v1434_v43 = vpack.c.bf16 %v484_v41, %v483_v40  ;;  %v485_v46 = vld [vmem:[#allocation7 + $0xc0] sm:$0xff]  ;;  %v486_v47 = vld [vmem:[#allocation7 + $0xd0] sm:$0xff]  ;;  %v599_v51 = vld [vmem:[#allocation7 + $0x38] sm:$0xff] }
  0xa1   : > { %1402 = vmatpush3.bf16.msra.mxu0 %v1401_v10  ;;  %v343_v48 = vld [vmem:[%s2061_s22] sm:$0xff]  ;;  %v1437_v52 = vpack.c.bf16 %v486_v47, %v485_v46  ;;  %v344_v53 = vld [vmem:[%s2061_s22 + $0x8] sm:$0xff]  ;;  %v1446_v54 = vpack.c.bf16 %v599_v51, %v598_v50  ;;  %v345_v57 = vld [vmem:[%s2061_s22 + $0x10] sm:$0xff] }
  0xa2   : > { %1403 = vmatprep.subr.bf16.mxu0 %v1818_v0  ;;  %v600_v55 = vld [vmem:[#allocation7 + $0x48] sm:$0xff]  ;;  %v601_v56 = vld [vmem:[#allocation7 + $0x58] sm:$0xff]  ;;  %v487_v13 = vld [vmem:[#allocation7 + $0xe0] sm:$0xff] }
  0xa3   : > { %1426 = vmatpush3.bf16.msra.mxu1 %v1425_v26  ;;  %v1449_v58 = vpack.c.bf16 %v601_v56, %v600_v55  ;;  %v602_v59 = vld [vmem:[#allocation7 + $0x68] sm:$0xff]  ;;  %v603_v60 = vld [vmem:[#allocation7 + $0x78] sm:$0xff]  ;;  %v488_v14 = vld [vmem:[#allocation7 + $0xf0] sm:$0xff] }
  0xa4   : > { %1427 = vmatprep.subr.bf16.mxu1 %v1818_v0  ;;  %v346_v61 = vld [vmem:[%s2061_s22 + $0x18] sm:$0xff]  ;;  %v1452_v62 = vpack.c.bf16 %v603_v60, %v602_v59  ;;  %v605_v2 = vld [vmem:[#allocation7 + $0x98] sm:$0xff]  ;;  %v347_v3 = vld [vmem:[%s2061_s22 + $0x20] sm:$0xff]  ;;  %v1440_v16 = vpack.c.bf16 %v488_v14, %v487_v13 }
  0xa5   : > { %1405 = vmatpush3.bf16.msra.mxu0 %v1404_v18  ;;  %v604_v63 = vld [vmem:[#allocation7 + $0x88] sm:$0xff]  ;;  %v607_v6 = vld [vmem:[#allocation7 + $0xb8] sm:$0xff]  ;;  %v1074_v19 = vld [vmem:[%s2270_s2] ss:$0 sm:$0xff] }
  0xa6   : > { %1406 = vmatprep.subr.bf16.mxu0 %v1818_v0  ;;  %v1455_v4 = vpack.c.bf16 %v605_v2, %v604_v63  ;;  %v606_v5 = vld [vmem:[#allocation7 + $0xa8] sm:$0xff]  ;;  %v348_v7 = vld [vmem:[%s2061_s22 + $0x28] sm:$0xff]  ;;  %v349_v11 = vld [vmem:[%s2061_s22 + $0x30] sm:$0xff]  ;;  %s1734_s22 = scalar_lea.vmem %s2220_s16, 896 }
  0xa7   : > { %1429 = vmatpush3.bf16.msra.mxu1 %v1428_v32  ;;  %v1458_v8 = vpack.c.bf16 %v607_v6, %v606_v5  ;;  %v608_v9 = vld [vmem:[#allocation7 + $0xc8] sm:$0xff]  ;;  %v609_v10 = vld [vmem:[#allocation7 + $0xd8] sm:$0xff]  ;;  %v817_v41 = vld [vmem:[#allocation8] sm:$0xff]  ;;  %p1735_p6 = scmp.ne.s32.totalorder %s2220_s16, %s1734_s22  ;;  %p1742_p7 = scmp.lt.s32.totalorder %s1740_s9, %s1734_s22 }
  0xa8   : > { %1430 = vmatprep.subr.bf16.mxu1 %v1818_v0  ;;  %v1461_v12 = vpack.c.bf16 %v609_v10, %v608_v9  ;;  %v610_v15 = vld [vmem:[#allocation7 + $0xe8] sm:$0xff]  ;;  %v611_v17 = vld [vmem:[#allocation7 + $0xf8] sm:$0xff]  ;;  %v821_v47 = vld [vmem:[#allocation8 + $0x20] sm:$0xff] }
  0xa9   : > { %1408 = vmatpush3.bf16.msra.mxu0 %v1407_v24  ;;  %v1464_v18 = vpack.c.bf16 %v611_v17, %v610_v15  ;;  %v820_v45 = vld [vmem:[#allocation8 + $0x18] sm:$0xff]  ;;  %v823_v50 = vld [vmem:[#allocation8 + $0x30] sm:$0xff]  ;;  %p1736_p8 = pnand %p1735_p6, %p2004_p11  ;;  %p1743_p9 = por %p1742_p7, %p1741_p3 }
  0xaa   : > { %1409 = vmatprep.subr.bf16.mxu0 %v1818_v0  ;;  %v824_v51 = vld [vmem:[#allocation8 + $0x38] sm:$0xff] }
  0xab   : > { %1432 = vmatpush3.bf16.msra.mxu1 %v1431_v38  ;;  %p1737_p10 = pneg %p1736_p8 }
  0xac   : > { %1433 = vmatprep.subr.bf16.mxu1 %v1818_v0 }
  0xad   : > { %1411 = vmatpush3.bf16.msra.mxu0 %v1410_v30  ;;  %p1744_p12 = pnand %p1743_p9, %p1737_p10 }
  0xae   : > { %1412 = vmatprep.subr.bf16.mxu0 %v1818_v0 }
  0xaf   : > { %1435 = vmatpush3.bf16.msra.mxu1 %v1434_v43  ;;  %v819_v43 = vld [vmem:[#allocation8 + $0x10] sm:$0xff] }
  0xb0   : > { %1436 = vmatprep.subr.bf16.mxu1 %v1818_v0  ;;  %v1470_v46 = vpack.c.bf16 %v820_v45, %v819_v43 }
  0xb1   : > { %1414 = vmatpush3.bf16.msra.mxu0 %v1413_v36 }
  0xb2   : > { %1415 = vmatprep.subr.bf16.mxu0 %v1818_v0 }
  0xb3   : > { %1438 = vmatpush3.bf16.msra.mxu1 %v1437_v52  ;;  %v1476_v52 = vpack.c.bf16 %v824_v51, %v823_v50 }
  0xb4   : > { %1439 = vmatprep.subr.bf16.mxu1 %v1818_v0 }
  0xb5   : > { %1417 = vmatpush3.bf16.msra.mxu0 %v1416_v42  ;;  %v818_v42 = vld [vmem:[#allocation8 + $0x8] sm:$0xff] }
  0xb6   : > { %1442 = vmatprep.subr.bf16.mxu0 %v1818_v0  ;;  %v1467_v44 = vpack.c.bf16 %v818_v42, %v817_v41 }
  0xb7   : > { %1441 = vmatpush3.bf16.msra.mxu1 %v1440_v16 }
  0xb8   : > { %1215 = vmatmul.mubr.f32.vlgmr.msra.gmra.mrb[0].mxu0 %v343_v48  ;;  %1466 = vmatprep.subr.bf16.mxu1 %v1818_v0  ;;  %v822_v48 = vld [vmem:[#allocation8 + $0x28] sm:$0xff] }
  0xb9   : > { %1217 = vmatprep.mubr.msk.f32.mxu0 %vm1819_vm0, %v1820_v1  ;;  %1444 = vmatpush3.bf16.msra.mxu0 %v1443_v49  ;;  %v1473_v49 = vpack.c.bf16 %v822_v48, %v821_v47 }
  0xba   : > { %1445 = vmatprep.subr.bf16.mxu0 %v1818_v0 }
  0xbc   : > { %1218 = vmatmul.mubr.f32.gmra.mrb[2].mxu0 %v344_v53  ;;  %v1076_v53 = vld [vmem:[%s2272_s4 + $0x1] ss:$0 sm:$0xff] }
  0xbd   : > { %1220 = vmatprep.mubr.msk.f32.mxu0 %vm1819_vm0, %v1820_v1  ;;  %1447 = vmatpush3.bf16.msra.mxu0 %v1446_v54 }
  0xbe   : > { %1448 = vmatprep.subr.bf16.mxu0 %v1818_v0 }
  0xc0   : > { %1221 = vmatmul.mubr.f32.gmra.mrb[4].mxu0 %v345_v57 }
  0xc1   : > { %1223 = vmatprep.mubr.msk.f32.mxu0 %vm1819_vm0, %v1820_v1  ;;  %1450 = vmatpush3.bf16.msra.mxu0 %v1449_v58 }
  0xc2   : > { %1451 = vmatprep.subr.bf16.mxu0 %v1818_v0 }
  0xc4   : > { %1224 = vmatmul.mubr.f32.gmra.mrb[6].mxu0 %v346_v61 }
  0xc5   : > { %1226 = vmatprep.mubr.msk.f32.mxu0 %vm1819_vm0, %v1820_v1  ;;  %1453 = vmatpush3.bf16.msra.mxu0 %v1452_v62 }
  0xc6   : > { %1454 = vmatprep.subr.bf16.mxu0 %v1818_v0 }
  0xc8   : > { %1227 = vmatmul.mubr.f32.gmra.mrb[8].mxu0 %v347_v3 }
  0xc9   : > { %1229 = vmatprep.mubr.msk.f32.mxu0 %vm1819_vm0, %v1820_v1  ;;  %1456 = vmatpush3.bf16.msra.mxu0 %v1455_v4 }
  0xca   : > { %1457 = vmatprep.subr.bf16.mxu0 %v1818_v0 }
  0xcc   : > { %1230 = vmatmul.mubr.f32.gmra.mrb[10].mxu0 %v348_v7 }
  0xcd   : > { %1232 = vmatprep.mubr.msk.f32.mxu0 %vm1819_vm0, %v1820_v1  ;;  %1459 = vmatpush3.bf16.msra.mxu0 %v1458_v8 }
  0xce   : > { %1460 = vmatprep.subr.bf16.mxu0 %v1818_v0 }
  0xd0   : > { %1233 = vmatmul.mubr.f32.gmra.mrb[12].mxu0 %v349_v11 }
  0xd1   : > { %1462 = vmatpush3.bf16.msra.mxu0 %v1461_v12  ;;  %1320 = vmatprep.mubr.msk.f32.mxu0 %vm1819_vm0, %v1820_v1 }
  0xd2   : > { %1463 = vmatprep.subr.bf16.mxu0 %v1818_v0 }
  0xd5   : > { %1465 = vmatpush3.bf16.msra.mxu0 %v1464_v18 }
 0x18b   : > { %v439_v20 = vpop.f32.mrb[0].mxu0 }
 0x18c   : > { %v440_v21 = vadd.f32 %v1074_v19, %v439_v20  ;;  %v1216_v22 = vpop.f32.mrb[1].mxu0 }
 0x18e   : > { %1268 = vmatmul.mubr.f32.vlgmr.msra.gmra.mrb[0].mxu1 %v440_v21  ;;  %1321 = vmatmul.mubr.f32.vlgmr.msra.gmra.mrb[14].mxu0 %v440_v21 }
 0x18f   : > { %v444_v23 = vpop.f32.mrb[2].mxu0  ;;  %1270 = vmatprep.mubr.msk.f32.mxu1 %vm1819_vm0, %v1820_v1  ;;  %1323 = vmatprep.mubr.msk.f32.mxu0 %vm1819_vm0, %v1820_v1 }
 0x190   : > { %v445_v24 = vadd.f32 %v1074_v19, %v444_v23  ;;  %v1219_v25 = vpop.f32.mrb[3].mxu0  ;;  %1468 = vmatpush3.bf16.msra.mxu1 %v1467_v44 }
 0x191   : > { %1469 = vmatprep.subr.bf16.mxu1 %v1818_v0 }
 0x192   : > { %1271 = vmatmul.mubr.f32.gmra.mrb[2].mxu1 %v445_v24  ;;  %1324 = vmatmul.mubr.f32.gmra.mrb[16].mxu0 %v445_v24 }
 0x193   : > { %v449_v26 = vpop.f32.mrb[4].mxu0  ;;  %1273 = vmatprep.mubr.msk.f32.mxu1 %vm1819_vm0, %v1820_v1  ;;  %1326 = vmatprep.mubr.msk.f32.mxu0 %vm1819_vm0, %v1820_v1 }
 0x194   : > { %v450_v27 = vadd.f32 %v1074_v19, %v449_v26  ;;  %v1222_v28 = vpop.f32.mrb[5].mxu0  ;;  %1471 = vmatpush3.bf16.msra.mxu1 %v1470_v46 }
 0x195   : > { %1472 = vmatprep.subr.bf16.mxu1 %v1818_v0 }
 0x196   : > { %1274 = vmatmul.mubr.f32.gmra.mrb[4].mxu1 %v450_v27  ;;  %1327 = vmatmul.mubr.f32.gmra.mrb[18].mxu0 %v450_v27 }
 0x197   : > { %v454_v29 = vpop.f32.mrb[6].mxu0  ;;  %1276 = vmatprep.mubr.msk.f32.mxu1 %vm1819_vm0, %v1820_v1  ;;  %1329 = vmatprep.mubr.msk.f32.mxu0 %vm1819_vm0, %v1820_v1 }
 0x198   : > { %v455_v30 = vadd.f32 %v1074_v19, %v454_v29  ;;  %v1225_v31 = vpop.f32.mrb[7].mxu0  ;;  %1474 = vmatpush3.bf16.msra.mxu1 %v1473_v49 }
 0x199   : > { %1475 = vmatprep.subr.bf16.mxu1 %v1818_v0 }
 0x19a   : > { %1277 = vmatmul.mubr.f32.gmra.mrb[6].mxu1 %v455_v30  ;;  %1330 = vmatmul.mubr.f32.gmra.mrb[20].mxu0 %v455_v30 }
 0x19b   : > { %v459_v32 = vpop.f32.mrb[8].mxu0  ;;  %1279 = vmatprep.mubr.msk.f32.mxu1 %vm1819_vm0, %v1820_v1  ;;  %1332 = vmatprep.mubr.msk.f32.mxu0 %vm1819_vm0, %v1820_v1 }
 0x19c   : > { %v460_v33 = vadd.f32 %v1074_v19, %v459_v32  ;;  %v1228_v34 = vpop.f32.mrb[9].mxu0  ;;  %1477 = vmatpush3.bf16.msra.mxu1 %v1476_v52 }
 0x19d   : > { %1478 = vmatprep.subr.bf16.mxu1 %v1818_v0 }
 0x19e   : > { %1280 = vmatmul.mubr.f32.gmra.mrb[8].mxu1 %v460_v33  ;;  %1333 = vmatmul.mubr.f32.gmra.mrb[22].mxu0 %v460_v33  ;;  %v1075_v33 = vld [vmem:[%s2272_s4] ss:$0 sm:$0xff] }
 0x19f   : > { %v464_v35 = vpop.f32.mrb[10].mxu0  ;;  %1282 = vmatprep.mubr.msk.f32.mxu1 %vm1819_vm0, %v1820_v1  ;;  %1335 = vmatprep.mubr.msk.f32.mxu0 %vm1819_vm0, %v1820_v1 }
 0x1a0   : > { %v465_v36 = vadd.f32 %v1074_v19, %v464_v35  ;;  %v1231_v37 = vpop.f32.mrb[11].mxu0 }
 0x1a2   : > { %1283 = vmatmul.mubr.f32.gmra.mrb[10].mxu1 %v465_v36  ;;  %1336 = vmatmul.mubr.f32.gmra.mrb[24].mxu0 %v465_v36 }
 0x1a3   : > { %v469_v38 = vpop.f32.mrb[12].mxu0  ;;  %1285 = vmatprep.mubr.msk.f32.mxu1 %vm1819_vm0, %v1820_v1  ;;  %1338 = vmatprep.mubr.msk.f32.mxu0 %vm1819_vm0, %v1820_v1 }
 0x1a4   : > { %v470_v39 = vadd.f32 %v1074_v19, %v469_v38  ;;  %v1234_v40 = vpop.f32.mrb[13].mxu0 }
 0x1a6   : > { %1286 = vmatmul.mubr.f32.gmra.mrb[12].mxu1 %v470_v39  ;;  %1339 = vmatmul.mubr.f32.gmra.mrb[26].mxu0 %v470_v39 }
 0x1a7   : > { %1373 = vmatprep.mubr.msk.f32.mxu1 %vm1819_vm0, %v1820_v1 }
 0x261   : > { %v562_v54 = vpop.f32.mrb[0].mxu1  ;;  %v685_v55 = vpop.f32.mrb[14].mxu0 }
 0x262   : > { %v686_v56 = vadd.f32 %v1076_v53, %v685_v55  ;;  %v1269_v57 = vpop.f32.mrb[1].mxu1  ;;  %v1322_v58 = vpop.f32.mrb[15].mxu0  ;;  %v563_v41 = vadd.f32 %v1075_v33, %v562_v54 }
 0x264   : > { %v1077_v59 = vmul.f32 -1.442695, %v686_v56 }
 0x265   : > { %v567_v60 = vpop.f32.mrb[2].mxu1  ;;  %v690_v61 = vpop.f32.mrb[16].mxu0 }
 0x266   : > { %1578 = vpow2.f32 %v1077_v59  ;;  %v691_v62 = vadd.f32 %v1076_v53, %v690_v61  ;;  %v1272_v63 = vpop.f32.mrb[3].mxu1  ;;  %v1325_v2 = vpop.f32.mrb[17].mxu0  ;;  %v568_v47 = vadd.f32 %v1075_v33, %v567_v60 }
 0x268   : > { %v1078_v3 = vmul.f32 -1.442695, %v691_v62 }
 0x269   : > { %v572_v4 = vpop.f32.mrb[4].mxu1  ;;  %v695_v5 = vpop.f32.mrb[18].mxu0 }
 0x26a   : > { %1580 = vpow2.f32 %v1078_v3  ;;  %v696_v6 = vadd.f32 %v1076_v53, %v695_v5  ;;  %v1275_v7 = vpop.f32.mrb[5].mxu1  ;;  %v1328_v8 = vpop.f32.mrb[19].mxu0 }
 0x26b   : > { %v826_v7 = vld [vmem:[#allocation8 + $0x48] sm:$0xff] }
 0x26c   : > { %v1079_v9 = vmul.f32 -1.442695, %v696_v6  ;;  %v825_v6 = vld [vmem:[#allocation8 + $0x40] sm:$0xff] }
 0x26d   : > { %v577_v10 = vpop.f32.mrb[6].mxu1  ;;  %v700_v11 = vpop.f32.mrb[20].mxu0 }
 0x26e   : > { %1582 = vpow2.f32 %v1079_v9  ;;  %v701_v12 = vadd.f32 %v1076_v53, %v700_v11  ;;  %v1278_v13 = vpop.f32.mrb[7].mxu1  ;;  %v1331_v14 = vpop.f32.mrb[21].mxu0  ;;  %v578_v59 = vadd.f32 %v1075_v33, %v577_v10  ;;  %v1479_v10 = vpack.c.bf16 %v826_v7, %v825_v6 }
 0x26f   : > { %v827_v13 = vld [vmem:[#allocation8 + $0x50] sm:$0xff]  ;;  %v828_v14 = vld [vmem:[#allocation8 + $0x58] sm:$0xff] }
 0x270   : > { %v1579_v15 = vpop.eup %1578  ;;  %v1080_v16 = vmul.f32 -1.442695, %v701_v12  ;;  %1480 = vmatpush3.bf16.msra.mxu1 %v1479_v10 }
 0x271   : > { %v740_v17 = vadd.f32 1.0, %v1579_v15  ;;  %v582_v18 = vpop.f32.mrb[8].mxu1  ;;  %v705_v19 = vpop.f32.mrb[22].mxu0  ;;  %1481 = vmatprep.subr.bf16.mxu1 %v1818_v0 }
 0x272   : > { %1584 = vpow2.f32 %v1080_v16  ;;  %v706_v20 = vadd.f32 %v1076_v53, %v705_v19  ;;  %v1281_v21 = vpop.f32.mrb[9].mxu1  ;;  %v1334_v22 = vpop.f32.mrb[23].mxu0  ;;  %v583_v2 = vadd.f32 %v1075_v33, %v582_v18 }
 0x273   : > { %1586 = vrcp.f32 %v740_v17  ;;  %v1482_v17 = vpack.c.bf16 %v828_v14, %v827_v13  ;;  %v830_v21 = vld [vmem:[#allocation8 + $0x68] sm:$0xff] }
 0x274   : > { %v1581_v23 = vpop.eup %1580  ;;  %v1081_v24 = vmul.f32 -1.442695, %v706_v20  ;;  %v829_v20 = vld [vmem:[#allocation8 + $0x60] sm:$0xff] }
 0x275   : > { %v741_v25 = vadd.f32 1.0, %v1581_v23  ;;  %v587_v26 = vpop.f32.mrb[10].mxu1  ;;  %v710_v27 = vpop.f32.mrb[24].mxu0  ;;  %1483 = vmatpush3.bf16.msra.mxu1 %v1482_v17  ;;  %v1485_v23 = vpack.c.bf16 %v830_v21, %v829_v20 }
 0x276   : > { %1588 = vpow2.f32 %v1081_v24  ;;  %v711_v28 = vadd.f32 %v1076_v53, %v710_v27  ;;  %v1284_v29 = vpop.f32.mrb[11].mxu1  ;;  %v1337_v30 = vpop.f32.mrb[25].mxu0  ;;  %v588_v8 = vadd.f32 %v1075_v33, %v587_v26  ;;  %1484 = vmatprep.subr.bf16.mxu1 %v1818_v0  ;;  %v831_v24 = vld [vmem:[#allocation8 + $0x70] sm:$0xff] }
 0x277   : > { %1590 = vrcp.f32 %v741_v25  ;;  %v832_v25 = vld [vmem:[#allocation8 + $0x78] sm:$0xff] }
 0x278   : > { %v1583_v31 = vpop.eup %1582  ;;  %v1082_v32 = vmul.f32 -1.442695, %v711_v28  ;;  %v1488_v26 = vpack.c.bf16 %v832_v25, %v831_v24 }
 0x279   : > { %v742_v34 = vadd.f32 1.0, %v1583_v31  ;;  %v592_v35 = vpop.f32.mrb[12].mxu1  ;;  %v715_v36 = vpop.f32.mrb[26].mxu0  ;;  %1486 = vmatpush3.bf16.msra.mxu1 %v1485_v23 }
 0x27a   : > { %1592 = vpow2.f32 %v1082_v32  ;;  %v716_v37 = vadd.f32 %v1076_v53, %v715_v36  ;;  %v1287_v38 = vpop.f32.mrb[13].mxu1  ;;  %v1340_v39 = vpop.f32.mrb[27].mxu0  ;;  %v573_v53 = vadd.f32 %v1075_v33, %v572_v4  ;;  %v593_v15 = vadd.f32 %v1075_v33, %v592_v35  ;;  %1487 = vmatprep.subr.bf16.mxu1 %v1818_v0 }
 0x27b   : > { %1594 = vrcp.f32 %v742_v34 }
 0x27c   : > { %v1585_v40 = vpop.eup %1584  ;;  %v1083_v42 = vmul.f32 -1.442695, %v716_v37 }
 0x27d   : > { %v1587_v43 = vpop.eup %1586  ;;  %v743_v44 = vadd.f32 1.0, %v1585_v40  ;;  %1489 = vmatpush3.bf16.msra.mxu1 %v1488_v26 }
 0x27e   : > { %1596 = vpow2.f32 %v1083_v42  ;;  %v2164_v45 = vmul.f32 %v1587_v43, %v563_v41 }
 0x27f   : > { %1598 = vrcp.f32 %v743_v44 }
 0x280   : > { %v1589_v46 = vpop.eup %1588  ;;  %v768_v48 = vmul.f32 %v2164_v45, %v2164_v45 }
 0x281   : > { %v1591_v49 = vpop.eup %1590  ;;  %v744_v50 = vadd.f32 1.0, %v1589_v46 }
 0x282   : > { %775 = vadd.xlane.f32.xlu0 %v768_v48  ;;  %v2168_v51 = vmul.f32 %v1591_v49, %v568_v47 }
 0x283   : > { %1600 = vrcp.f32 %v744_v50 }
 0x284   : > { %v1593_v52 = vpop.eup %1592  ;;  %v769_v54 = vmul.f32 %v2168_v51, %v2168_v51 }
 0x285   : > { %v1595_v55 = vpop.eup %1594  ;;  %v745_v56 = vadd.f32 1.0, %v1593_v52 }
 0x286   : > { %777 = vadd.xlane.f32.xlu0 %v769_v54  ;;  %v2172_v57 = vmul.f32 %v1595_v55, %v573_v53 }
 0x287   : > { %1602 = vrcp.f32 %v745_v56 }
 0x288   : > { %v1597_v58 = vpop.eup %1596  ;;  %v770_v60 = vmul.f32 %v2172_v57, %v2172_v57 }
 0x289   : > { %v1599_v61 = vpop.eup %1598  ;;  %v746_v62 = vadd.f32 1.0, %v1597_v58 }
 0x28a   : > { %779 = vadd.xlane.f32.xlu1 %v770_v60  ;;  %v2176_v63 = vmul.f32 %v1599_v61, %v578_v59  ;;  %v1084_v61 = vld [vmem:[%s2274_s6] ss:$0 sm:$0xff] }
 0x28b   : > { %1604 = vrcp.f32 %v746_v62 }
 0x28c   : > { %v771_v3 = vmul.f32 %v2176_v63, %v2176_v63 }
 0x28d   : > { %v1601_v4 = vpop.eup %1600 }
 0x28e   : > { %781 = vadd.xlane.f32.xlu1 %v771_v3  ;;  %v2180_v5 = vmul.f32 %v1601_v4, %v583_v2 }
 0x290   : > { %v772_v9 = vmul.f32 %v2180_v5, %v2180_v5 }
 0x291   : > { %v1603_v11 = vpop.eup %1602 }
 0x292   : > { %783 = vadd.xlane.f32.xlu0 %v772_v9  ;;  %v2184_v12 = vmul.f32 %v1603_v11, %v588_v8 }
 0x294   : > { %v773_v16 = vmul.f32 %v2184_v12, %v2184_v12 }
 0x295   : > { %v1605_v18 = vpop.eup %1604 }
 0x296   : > { %785 = vadd.xlane.f32.xlu1 %v773_v16  ;;  %v2189_v19 = vmul.f32 %v1605_v18, %v593_v15 }
 0x298   : > { %v774_v22 = vmul.f32 %v2189_v19, %v2189_v19 }
 0x29a   : > { %787 = vadd.xlane.f32.xlu0 %v774_v22 }
 0x30f   : > { %v776_v27 = vpop.xlane.xlu0 %775 }
 0x310   : > { %v789_v28 = vmul.f32 0.015625, %v776_v27 }
 0x312   : > { %v796_v29 = vadd.f32 1e-06, %v789_v28 }
 0x313   : > { %v778_v30 = vpop.xlane.xlu0 %777 }
 0x314   : > { %1606 = vrsqrt.f32 %v796_v29  ;;  %v790_v31 = vmul.f32 0.015625, %v778_v30 }
 0x316   : > { %v797_v32 = vadd.f32 1e-06, %v790_v31 }
 0x317   : > { %v780_v33 = vpop.xlane.xlu1 %779 }
 0x318   : > { %1608 = vrsqrt.f32 %v797_v32  ;;  %v791_v34 = vmul.f32 0.015625, %v780_v33 }
 0x31a   : > { %v798_v35 = vadd.f32 1e-06, %v791_v34 }
 0x31b   : > { %v782_v36 = vpop.xlane.xlu1 %781 }
 0x31c   : > { %1610 = vrsqrt.f32 %v798_v35  ;;  %v792_v37 = vmul.f32 0.015625, %v782_v36 }
 0x31e   : > { %v1607_v38 = vpop.eup %1606  ;;  %v799_v0 = vadd.f32 1e-06, %v792_v37 }
 0x31f   : > { %v784_v39 = vpop.xlane.xlu0 %783  ;;  %v810_v40 = vmul.f32 %v1607_v38, %v2164_v45 }
 0x320   : > { %1612 = vrsqrt.f32 %v799_v0  ;;  %v793_v41 = vmul.f32 0.015625, %v784_v39 }
 0x321   : > { %1374 = vmatmul.mubr.f32.vlgmr.msra.gmra.mrb[14].mxu1 %v810_v40 }
 0x322   : > { %v1609_v42 = vpop.eup %1608  ;;  %v800_v43 = vadd.f32 1e-06, %v793_v41  ;;  %1376 = vmatprep.mubr.msk.f32.mxu1 %vm1819_vm0, %v1820_v1 }
 0x323   : > { %v786_v44 = vpop.xlane.xlu1 %785  ;;  %v811_v46 = vmul.f32 %v1609_v42, %v2168_v51 }
 0x324   : > { %1614 = vrsqrt.f32 %v800_v43  ;;  %v794_v47 = vmul.f32 0.015625, %v786_v44 }
 0x325   : > { %1377 = vmatmul.mubr.f32.gmra.mrb[16].mxu1 %v811_v46 }
 0x326   : > { %v1611_v48 = vpop.eup %1610  ;;  %v801_v49 = vadd.f32 1e-06, %v794_v47  ;;  %1379 = vmatprep.mubr.msk.f32.mxu1 %vm1819_vm0, %v1820_v1 }
 0x327   : > { %v788_v45 = vpop.xlane.xlu0 %787  ;;  %v812_v50 = vmul.f32 %v1611_v48, %v2172_v57 }
 0x328   : > { %1616 = vrsqrt.f32 %v801_v49  ;;  %v795_v52 = vmul.f32 0.015625, %v788_v45 }
 0x329   : > { %1380 = vmatmul.mubr.f32.gmra.mrb[18].mxu1 %v812_v50 }
 0x32a   : > { %v1613_v53 = vpop.eup %1612  ;;  %v802_v54 = vadd.f32 1e-06, %v795_v52  ;;  %1382 = vmatprep.mubr.msk.f32.mxu1 %vm1819_vm0, %v1820_v1 }
 0x32b   : > { %v813_v51 = vmul.f32 %v1613_v53, %v2176_v63 }
 0x32c   : > { %1618 = vrsqrt.f32 %v802_v54 }
 0x32d   : > { %1383 = vmatmul.mubr.f32.gmra.mrb[20].mxu1 %v813_v51 }
 0x32e   : > { %v1615_v55 = vpop.eup %1614  ;;  %1385 = vmatprep.mubr.msk.f32.mxu1 %vm1819_vm0, %v1820_v1 }
 0x32f   : > { %v814_v56 = vmul.f32 %v1615_v55, %v2180_v5 }
 0x331   : > { %1386 = vmatmul.mubr.f32.gmra.mrb[22].mxu1 %v814_v56 }
 0x332   : > { %v1617_v57 = vpop.eup %1616  ;;  %1388 = vmatprep.mubr.msk.f32.mxu1 %vm1819_vm0, %v1820_v1 }
 0x333   : > { %v815_v58 = vmul.f32 %v1617_v57, %v2184_v12 }
 0x335   : > { %1389 = vmatmul.mubr.f32.gmra.mrb[24].mxu1 %v815_v58 }
 0x336   : > { %v1619_v59 = vpop.eup %1618  ;;  %1391 = vmatprep.mubr.msk.f32.mxu1 %vm1819_vm0, %v1820_v1 }
 0x337   : > { %v816_v60 = vmul.f32 %v1619_v59, %v2189_v19 }
 0x339   : > { %1392 = vmatmul.mubr.f32.gmra.mrb[26].mxu1 %v816_v60 }
 0x3f4   : > { %v906_v62 = vpop.f32.mrb[14].mxu1 }
 0x3f5   : > { %v907_v63 = vadd.f32 %v1084_v61, %v906_v62  ;;  %v1375_v2 = vpop.f32.mrb[15].mxu1 }
 0x3f7   : > { %940 = vst [vmem:[%s340_s23] sm:$0xff] %v907_v63 }
 0x3f8   : > { %v911_v3 = vpop.f32.mrb[16].mxu1 }
 0x3f9   : > { %v912_v4 = vadd.f32 %v1084_v61, %v911_v3  ;;  %v1378_v5 = vpop.f32.mrb[17].mxu1 }
 0x3fb   : > { %941 = vst [vmem:[%s340_s23 + $0x8] sm:$0xff] %v912_v4 }
 0x3fc   : > { %v916_v6 = vpop.f32.mrb[18].mxu1 }
 0x3fd   : > { %v917_v1 = vadd.f32 %v1084_v61, %v916_v6  ;;  %v1381_v7 = vpop.f32.mrb[19].mxu1 }
 0x3ff   : > { %942 = vst [vmem:[%s340_s23 + $0x10] sm:$0xff] %v917_v1 }
 0x400   : > { %v921_v8 = vpop.f32.mrb[20].mxu1 }
 0x401   : > { %v922_v9 = vadd.f32 %v1084_v61, %v921_v8  ;;  %v1384_v10 = vpop.f32.mrb[21].mxu1 }
 0x403   : > { %943 = vst [vmem:[%s340_s23 + $0x18] sm:$0xff] %v922_v9 }
 0x404   : > { %v926_v11 = vpop.f32.mrb[22].mxu1 }
 0x405   : > { %v927_v12 = vadd.f32 %v1084_v61, %v926_v11  ;;  %v1387_v13 = vpop.f32.mrb[23].mxu1 }
 0x407   : > { %944 = vst [vmem:[%s340_s23 + $0x20] sm:$0xff] %v927_v12 }
 0x408   : > { %v931_v14 = vpop.f32.mrb[24].mxu1 }
 0x409   : > { %v932_v15 = vadd.f32 %v1084_v61, %v931_v14  ;;  %v1390_v16 = vpop.f32.mrb[25].mxu1 }
 0x40b   : > { %945 = vst [vmem:[%s340_s23 + $0x28] sm:$0xff] %v932_v15 }
 0x40c   : > { %v936_v17 = vpop.f32.mrb[26].mxu1 }
 0x40d   : > { %v937_v18 = vadd.f32 %v1084_v61, %v936_v17  ;;  %v1393_v19 = vpop.f32.mrb[27].mxu1 }
 0x40f   : > { %946 = vst [vmem:[%s340_s23 + $0x30] sm:$0xff] %v937_v18 }
 0x410   : > { %1747 = shalt.err (!%p1744_p12)
}
 0x411   : > { %s1748_s29 = scalar_lea.hbm %s2225_s12, 896  ;;  %s1752_s1 = scalar_lea.hbm %s2275_s7, 3584 }
 0x412   : > { %p1749_p0 = scmp.ne.s32.totalorder %s2225_s12, %s1748_s29  ;;  %p1753_p1 = scmp.lt.u32.totalorder %s2225_s12, %s2275_s7 }
 0x413   : > { %p1754_p2 = scmp.lt.u32.totalorder %s1752_s1, %s1748_s29  ;;  %p1756_p6 = scmp.lt.u32.totalorder %s1748_s29, %s2225_s12 }
 0x414   : > { %p1750_p5 = pnand %p1749_p0, %p2004_p11 }
 0x415   : > { %p1755_p4 = por %p1754_p2, %p1753_p1 }
 0x416   : > { %p1751_p13 = pneg %p1750_p5 }
 0x417   : > { %p1757_p8 = por %p1756_p6, %p1755_p4 }
 0x419   : > { %p1758_p10 = pnand %p1757_p8, %p1751_p13 }
 0x41b   : > { %1761 = shalt.err (!%p1758_p10)
}
 0x41c   : > { %s1822_s23 = smov 128   ;;  %s1823_s18 = smov 8  }
 0x41d   : > { %1506 = dma.vmem_to_hbm [thread:$0]  (%p2004_p11), %s2220_s16, 896, %s2225_s12, %s948_s17, %s1822_s23, %s1822_s23, %s1823_s18  }
 0x41e PF: > { %s2305_s14 = sld [smem:[#allocation15_spill]]  ;;  %p1533_p3 = scmp.ge.s32.totalorder %s1808_s27, 2 }
 0x41f   : > { %s976_s3 = sand.u32 1, %s1796_s24  }
 0x420   : > { %s977_s22 = scalar_lea.sflag [#allocation4], %s976_s3 }
 0x424   : > { %p2306_p7 = scmp.ne.s32.totalorder %s2305_s14, 0 }
 0x426   : > { %p1523_p9 = pnand %p1533_p3, %p2306_p7 }
 0x428   : > { %1791 = dma.done.wait (!%p1523_p9), %s977_s22, 896  }
 0x429   : > { %1793 = vsyncadd (!%p1523_p9), %s977_s22, 4294966400  ;;  %p22_p12 = scmp.ge.s32.totalorder %s1969_s21, 6   ;;  %s2307_s24 = smov %s1800_s25 }
 0x42a   : > { %s2308_s25 = smov %s1804_s26  ;;  %s2309_s26 = smov %s2000_s13 }
 0x42b   : > { %s2310_s27 = smov %s1969_s21  ;;  %24 = sbr.rel (!%p22_p12) target bundleno = 10 (0xa), region = 105 }
 0x432   :  { %982 = vsyncpa [#allocation3], 1 }
 0x433   :  { %984 = vsyncpa [#allocation3 + $0x1], 1 }
 0x434   :  { %985 = vsyncpa [#allocation6], 1 }
 0x435   :  { %986 = vsyncpa [#allocation9], 1 }
 0x436   :  { %987 = vsyncpa [#allocation4], 1 }
 0x437   :  { %989 = vsyncpa [#allocation4 + $0x1], 1 }

</bundles_post_ra>
